<compile_context>
chip_gen: v5e
topology: v5e:2x2
jax: 0.10.0
libtpu: 0.0.40
codegen_flags: <defaults>
</compile_context>

<pallas_src>
import functools
import math

import jax
import jax.numpy as jnp
from jax import lax
from jax.experimental import pallas as pl
from jax.experimental.pallas import tpu as pltpu

GP = 128  # per-gate lane pitch: each GRU gate occupies its own 128-lane slot


def _round_up(x, m):
    return ((x + m - 1) // m) * m


def _make_kernel(S: int, Tm1: int, Bp: int, H: int, Vp: int):
    """Fused encoder-GRU + decoder-GRU + batched output projection."""
    GP3 = 3 * GP
    f32 = jnp.float32
    bf16 = jnp.bfloat16

    def kernel(enc_x_ref, dec_x_ref,
               wx_e_ref, wh_e_ref, wx_d_ref, wh_d_ref,
               wout_ref, bias_ref,
               out_ref,
               ge_ref, gd_ref, hs_ref):
        # Packed biases (single (8, BW) input):
        #   row 0: enc input-side [r|z|n]  (r/z folded bih+bhh; n = bin only)
        #   row 1: enc hidden-side [0|0|bhn]
        #   row 2: dec input-side,  row 3: dec hidden-side
        #   row 4: fc_out bias (lanes [0:Vp])
        bx_e = bias_ref[0:1, :GP3]
        bh_e = bias_ref[1:2, :GP3]
        bx_d = bias_ref[2:3, :GP3]
        bh_d = bias_ref[3:4, :GP3]

        # ---- hoisted, fused input projections (off the serial critical path):
        #      one packed bf16 dot per side over ALL timesteps, f32 accumulate.
        ge_ref[...] = jnp.dot(enc_x_ref[...], wx_e_ref[...],
                              preferred_element_type=f32) + bx_e
        gd_ref[...] = jnp.dot(dec_x_ref[...], wx_d_ref[...],
                              preferred_element_type=f32) + bx_d

        def gru_step(h, gx, wh, bh):
            # ONE fused h-dot per step: [Bp,H]@[H,3*GP] (bf16 in, f32 acc).
            # Gates live in 128-aligned lane slots so the splits are free
            # (no cross-lane rotation).
            gh = jnp.dot(h.astype(bf16), wh, preferred_element_type=f32) + bh
            r = jax.nn.sigmoid(gx[:, 0:H] + gh[:, 0:H])
            z = jax.nn.sigmoid(gx[:, GP:GP + H] + gh[:, GP:GP + H])
            n = jnp.tanh(gx[:, 2 * GP:2 * GP + H]
                         + r * gh[:, 2 * GP:2 * GP + H])
            return n + z * (h - n)            # == (1 - z) * n + z * h

        # ---- encoder recurrence: h carried as a loop value (stays in vregs) ----
        wh_e = wh_e_ref[...]

        def enc_body(t, h):
            row = pl.multiple_of(t * Bp, Bp)
            return gru_step(h, ge_ref[pl.ds(row, Bp), :], wh_e, bh_e)

        h = lax.fori_loop(0, S, enc_body, jnp.zeros((Bp, H), f32), unroll=True)

        # ---- decoder recurrence: decoder weights loaded only now, so encoder
        #      and decoder weight vregs are never live at the same time ----
        wh_d = wh_d_ref[...]

        def dec_body(t, h):
            row = pl.multiple_of(t * Bp, Bp)
            h_new = gru_step(h, gd_ref[pl.ds(row, Bp), :], wh_d, bh_d)
            hs_ref[pl.ds(row, Bp), :] = h_new
            return h_new

        lax.fori_loop(0, Tm1, dec_body, h, unroll=True)

        # ---- single batched, lane-dense output projection + store ----
        bout = bias_ref[4:5, :Vp]
        logits = jnp.dot(hs_ref[...].astype(bf16), wout_ref[...],
                         preferred_element_type=f32) + bout
        out_ref[0:Bp, :] = jnp.zeros((Bp, Vp), f32)       # t = 0 row stays zero
        out_ref[Bp:(Tm1 + 1) * Bp, :] = logits            # rows for t = 1..T-1

    return kernel


@jax.jit
def clue2ans_forward(params, clues, answers):
    """Pallas implementation of Clue2Ans.forward with teacher_forcing_ratio=1.0.

    clues:   int32 [B, S]
    answers: int32 [B, T]
    returns: float32 [B, T, V]
    """
    B, S = clues.shape
    _, T = answers.shape
    E = params["enc_emb"].shape[1]
    H = params["whh_e"].shape[0]
    V = params["wout"].shape[1]
    Tm1 = T - 1
    GP3 = 3 * GP

    Bp = _round_up(B, 8)       # fill all 8 f32 sublanes of every vreg
    Vp = _round_up(V, 128)     # lane-dense (unmasked) output stores
    BW = max(GP3, Vp)          # width of the packed bias array

    f32 = jnp.float32
    bf16 = jnp.bfloat16

    # --- glue: embedding gathers + dropout(identity) + pad + layout + bf16 ---
    enc_emb = params["enc_emb"][clues]               # [B, S, E]
    dec_emb = params["dec_emb"][answers[:, :-1]]     # [B, T-1, E] (teacher forcing)
    pad = ((0, Bp - B), (0, 0), (0, 0))
    enc_x = jnp.transpose(jnp.pad(enc_emb, pad), (1, 0, 2)) \
               .reshape(S * Bp, E).astype(bf16)      # time-major, flat
    dec_x = jnp.transpose(jnp.pad(dec_emb, pad), (1, 0, 2)) \
               .reshape(Tm1 * Bp, E).astype(bf16)

    def pack(wih, whh, bih, bhh):
        # gate order [r|z|n]; each gate padded into its own 128-lane slot
        wx = jnp.zeros((E, GP3), f32)
        wh = jnp.zeros((H, GP3), f32)
        bx = jnp.zeros((1, GP3), f32)
        bh = jnp.zeros((1, GP3), f32)
        for k in range(3):
            wx = wx.at[:, k * GP:k * GP + H].set(wih[:, k * H:(k + 1) * H])
            wh = wh.at[:, k * GP:k * GP + H].set(whh[:, k * H:(k + 1) * H])
        bx = bx.at[:, 0:H].set(bih[:, 0:H] + bhh[:, 0:H])                    # r (folded)
        bx = bx.at[:, GP:GP + H].set(bih[:, H:2 * H] + bhh[:, H:2 * H])      # z (folded)
        bx = bx.at[:, 2 * GP:2 * GP + H].set(bih[:, 2 * H:3 * H])            # n (input)
        bh = bh.at[:, 2 * GP:2 * GP + H].set(bhh[:, 2 * H:3 * H])            # bhn
        return wx.astype(bf16), wh.astype(bf16), bx, bh

    wx_e, wh_e, bx_e, bh_e = pack(params["wih_e"], params["whh_e"],
                                  params["bih_e"], params["bhh_e"])
    wx_d, wh_d, bx_d, bh_d = pack(params["wih_d"], params["whh_d"],
                                  params["bih_d"], params["bhh_d"])

    wout = jnp.pad(params["wout"], ((0, 0), (0, Vp - V))).astype(bf16)
    bout = jnp.pad(params["bout"], ((0, 0), (0, Vp - V)))

    bias_pack = jnp.zeros((8, BW), f32)
    bias_pack = bias_pack.at[0:1, :GP3].set(bx_e)
    bias_pack = bias_pack.at[1:2, :GP3].set(bh_e)
    bias_pack = bias_pack.at[2:3, :GP3].set(bx_d)
    bias_pack = bias_pack.at[3:4, :GP3].set(bh_d)
    bias_pack = bias_pack.at[4:5, :Vp].set(bout)

    kernel = _make_kernel(S, Tm1, Bp, H, Vp)
    vmem = functools.partial(pl.BlockSpec, memory_space=pltpu.MemorySpace.VMEM)

    flops = (2 * S * Bp * E * GP3 + 2 * Tm1 * Bp * E * GP3        # input projections
             + 2 * (S + Tm1) * Bp * H * GP3                       # recurrent h-dots
             + 2 * Tm1 * Bp * H * Vp)                             # output projection
    transcendentals = 3 * (S + Tm1) * Bp * H                      # 2x sigmoid + tanh
    bytes_accessed = (enc_x.size * 2 + dec_x.size * 2
                      + (wx_e.size + wh_e.size + wx_d.size + wh_d.size
                         + wout.size) * 2
                      + bias_pack.size * 4 + T * Bp * Vp * 4)

    out_flat = pl.pallas_call(
        kernel,
        out_shape=jax.ShapeDtypeStruct((T * Bp, Vp), f32),
        in_specs=[vmem()] * 8,
        out_specs=vmem(),
        scratch_shapes=[
            pltpu.VMEM((S * Bp, GP3), f32),     # enc packed gate inputs [r|z|n]
            pltpu.VMEM((Tm1 * Bp, GP3), f32),   # dec packed gate inputs [r|z|n]
            pltpu.VMEM((Tm1 * Bp, H), f32),     # stashed decoder hidden states
        ],
        cost_estimate=pl.CostEstimate(flops=flops,
                                      transcendentals=transcendentals,
                                      bytes_accessed=bytes_accessed),
    )(enc_x, dec_x, wx_e, wh_e, wx_d, wh_d, wout, bias_pack)

    out = out_flat.reshape(T, Bp, Vp).transpose(1, 0, 2)   # [Bp, T, Vp]
    return out[:B, :, :V]


def init_params(key, input_dim, output_dim, emb_dim, hid_dim):
    """Deterministic synthetic parameters (PyTorch-style uniform ranges)."""
    ks = jax.random.split(key, 12)
    bound = 1.0 / math.sqrt(hid_dim)

    def u(k, shape, b):
        return jax.random.uniform(k, shape, jnp.float32, -b, b)

    return {
        # embedding tables
        "enc_emb": jax.random.normal(ks[0], (input_dim, emb_dim), jnp.float32),
        "dec_emb": jax.random.normal(ks[1], (output_dim, emb_dim), jnp.float32),
        # encoder GRU (stored transposed: x @ W form), gate order [r|z|n]
        "wih_e": u(ks[2], (emb_dim, 3 * hid_dim), bound),
        "whh_e": u(ks[3], (hid_dim, 3 * hid_dim), bound),
        "bih_e": u(ks[4], (1, 3 * hid_dim), bound),
        "bhh_e": u(ks[5], (1, 3 * hid_dim), bound),
        # decoder GRU
        "wih_d": u(ks[6], (emb_dim, 3 * hid_dim), bound),
        "whh_d": u(ks[7], (hid_dim, 3 * hid_dim), bound),
        "bih_d": u(ks[8], (1, 3 * hid_dim), bound),
        "bhh_d": u(ks[9], (1, 3 * hid_dim), bound),
        # fc_out
        "wout": u(ks[10], (hid_dim, output_dim), 1.0 / math.sqrt(hid_dim)),
        "bout": u(ks[11], (1, output_dim), 1.0 / math.sqrt(hid_dim)),
    }


if __name__ == "__main__":
    # Small shapes consistent with the module's forward.
    B, SRC_LEN, TRG_LEN = 2, 8, 8
    INPUT_DIM, OUTPUT_DIM = 50, 64        # encoder / decoder vocab sizes
    EMB_DIM, HID_DIM = 32, 32
    PAD_IDX = 0

    root = jax.random.PRNGKey(0)
    k_params, k_clues, k_ans = jax.random.split(root, 3)

    params = init_params(k_params, INPUT_DIM, OUTPUT_DIM, EMB_DIM, HID_DIM)
    clues = jax.random.randint(k_clues, (B, SRC_LEN), 0, INPUT_DIM, jnp.int32)
    answers = jax.random.randint(k_ans, (B, TRG_LEN), 0, OUTPUT_DIM, jnp.int32)

    outputs = clue2ans_forward(params, clues, answers)
    jax.block_until_ready(outputs)
    assert outputs.shape == (B, TRG_LEN, OUTPUT_DIM)
    assert bool(jnp.all(jnp.isfinite(outputs)))
    assert bool(jnp.all(outputs[:, 0, :] == 0.0))  # t=0 row untouched, as in torch
    print("KERNEL_OK")
</pallas_src>

<mosaic_0001>
module attributes {stable_mosaic.version = 11 : i64} {
  func.func @kernel(%arg0: memref<64x32xbf16, #tpu.memory_space<vmem>>, %arg1: memref<56x32xbf16, #tpu.memory_space<vmem>>, %arg2: memref<32x384xbf16, #tpu.memory_space<vmem>>, %arg3: memref<32x384xbf16, #tpu.memory_space<vmem>>, %arg4: memref<32x384xbf16, #tpu.memory_space<vmem>>, %arg5: memref<32x384xbf16, #tpu.memory_space<vmem>>, %arg6: memref<32x128xbf16, #tpu.memory_space<vmem>>, %arg7: memref<8x384xf32, #tpu.memory_space<vmem>>, %arg8: memref<64x128xf32, #tpu.memory_space<vmem>>, %arg9: memref<64x384xf32, #tpu.memory_space<vmem>>, %arg10: memref<56x384xf32, #tpu.memory_space<vmem>>, %arg11: memref<56x32xf32, #tpu.memory_space<vmem>>) attributes {dimension_semantics = [], scalar_prefetch = 0 : i64, scratch_operands = 3 : i64, tpu.core_type = #tpu.core_type<tc>} {
    %c0 = arith.constant 0 : index
    %c0_0 = arith.constant 0 : index
    %0 = vector.load %arg7[%c0, %c0_0] : memref<8x384xf32, #tpu.memory_space<vmem>>, vector<1x384xf32>
    %c1 = arith.constant 1 : index
    %c0_1 = arith.constant 0 : index
    %1 = vector.load %arg7[%c1, %c0_1] : memref<8x384xf32, #tpu.memory_space<vmem>>, vector<1x384xf32>
    %c2 = arith.constant 2 : index
    %c0_2 = arith.constant 0 : index
    %2 = vector.load %arg7[%c2, %c0_2] : memref<8x384xf32, #tpu.memory_space<vmem>>, vector<1x384xf32>
    %c3 = arith.constant 3 : index
    %c0_3 = arith.constant 0 : index
    %3 = vector.load %arg7[%c3, %c0_3] : memref<8x384xf32, #tpu.memory_space<vmem>>, vector<1x384xf32>
    %c0_4 = arith.constant 0 : index
    %c0_5 = arith.constant 0 : index
    %4 = vector.load %arg0[%c0_4, %c0_5] : memref<64x32xbf16, #tpu.memory_space<vmem>>, vector<64x32xbf16>
    %c0_6 = arith.constant 0 : index
    %c0_7 = arith.constant 0 : index
    %5 = vector.load %arg2[%c0_6, %c0_7] : memref<32x384xbf16, #tpu.memory_space<vmem>>, vector<32x384xbf16>
    %cst = arith.constant dense<0.000000e+00> : vector<64x384xf32>
    %6 = tpu.matmul %4, %5, %cst {dimension_numbers = #tpu.dot_dimension_numbers<[1], [0], [0], [1], [0, 0, 1, 1], [], []>} : vector<64x32xbf16>, vector<32x384xbf16>, vector<64x384xf32> -> vector<64x384xf32>
    %7 = vector.broadcast %0 : vector<1x384xf32> to vector<64x384xf32>
    %8 = arith.addf %6, %7 : vector<64x384xf32>
    %c0_8 = arith.constant 0 : index
    %c0_9 = arith.constant 0 : index
    %9 = vector.load %arg9[%c0_8, %c0_9] : memref<64x384xf32, #tpu.memory_space<vmem>>, vector<64x384xf32>
    tpu.vector_store %arg9[%c0_8, %c0_9], %8 {strides = array<i32>} : memref<64x384xf32, #tpu.memory_space<vmem>>, vector<64x384xf32>,
    %c0_10 = arith.constant 0 : index
    %c0_11 = arith.constant 0 : index
    %10 = vector.load %arg1[%c0_10, %c0_11] : memref<56x32xbf16, #tpu.memory_space<vmem>>, vector<56x32xbf16>
    %c0_12 = arith.constant 0 : index
    %c0_13 = arith.constant 0 : index
    %11 = vector.load %arg4[%c0_12, %c0_13] : memref<32x384xbf16, #tpu.memory_space<vmem>>, vector<32x384xbf16>
    %cst_14 = arith.constant dense<0.000000e+00> : vector<56x384xf32>
    %12 = tpu.matmul %10, %11, %cst_14 {dimension_numbers = #tpu.dot_dimension_numbers<[1], [0], [0], [1], [0, 0, 1, 1], [], []>} : vector<56x32xbf16>, vector<32x384xbf16>, vector<56x384xf32> -> vector<56x384xf32>
    %13 = vector.broadcast %2 : vector<1x384xf32> to vector<56x384xf32>
    %14 = arith.addf %12, %13 : vector<56x384xf32>
    %c0_15 = arith.constant 0 : index
    %c0_16 = arith.constant 0 : index
    %15 = vector.load %arg10[%c0_15, %c0_16] : memref<56x384xf32, #tpu.memory_space<vmem>>, vector<56x384xf32>
    tpu.vector_store %arg10[%c0_15, %c0_16], %14 {strides = array<i32>} : memref<56x384xf32, #tpu.memory_space<vmem>>, vector<56x384xf32>,
    %c0_17 = arith.constant 0 : index
    %c0_18 = arith.constant 0 : index
    %16 = vector.load %arg3[%c0_17, %c0_18] : memref<32x384xbf16, #tpu.memory_space<vmem>>, vector<32x384xbf16>
    %cst_19 = arith.constant 0.000000e+00 : f32
    %17 = vector.broadcast %cst_19 : f32 to vector<8x32xf32>
    %c0_i32 = arith.constant 0 : i32
    %c8_i32 = arith.constant 8 : i32
    %18 = arith.muli %c0_i32, %c8_i32 : i32
    %19 = tpu.assume_multiple %18, 8 : i32
    %20 = arith.index_cast %19 : i32 to index
    %c0_20 = arith.constant 0 : index
    %21 = vector.load %arg9[%20, %c0_20] : memref<64x384xf32, #tpu.memory_space<vmem>>, vector<8x384xf32>
    %22 = arith.truncf %17 : vector<8x32xf32> to vector<8x32xbf16>
    %cst_21 = arith.constant dense<0.000000e+00> : vector<8x384xf32>
    %23 = tpu.matmul %22, %16, %cst_21 {dimension_numbers = #tpu.dot_dimension_numbers<[1], [0], [0], [1], [0, 0, 1, 1], [], []>} : vector<8x32xbf16>, vector<32x384xbf16>, vector<8x384xf32> -> vector<8x384xf32>
    %24 = vector.broadcast %1 : vector<1x384xf32> to vector<8x384xf32>
    %25 = arith.addf %23, %24 : vector<8x384xf32>
    %26 = vector.extract_strided_slice %21 {offsets = [0, 0], sizes = [8, 32], strides = [1, 1]} : vector<8x384xf32> to vector<8x32xf32>
    %27 = vector.extract_strided_slice %25 {offsets = [0, 0], sizes = [8, 32], strides = [1, 1]} : vector<8x384xf32> to vector<8x32xf32>
    %28 = arith.addf %26, %27 : vector<8x32xf32>
    %29 = arith.negf %28 : vector<8x32xf32>
    %30 = math.exp %29 : vector<8x32xf32>
    %cst_22 = arith.constant 1.000000e+00 : f32
    %31 = vector.broadcast %cst_22 : f32 to vector<8x32xf32>
    %32 = arith.addf %31, %30 : vector<8x32xf32>
    %33 = arith.divf %31, %32 : vector<8x32xf32>
    %34 = vector.extract_strided_slice %21 {offsets = [0, 128], sizes = [8, 32], strides = [1, 1]} : vector<8x384xf32> to vector<8x32xf32>
    %35 = vector.extract_strided_slice %25 {offsets = [0, 128], sizes = [8, 32], strides = [1, 1]} : vector<8x384xf32> to vector<8x32xf32>
    %36 = arith.addf %34, %35 : vector<8x32xf32>
    %37 = arith.negf %36 : vector<8x32xf32>
    %38 = math.exp %37 : vector<8x32xf32>
    %cst_23 = arith.constant 1.000000e+00 : f32
    %39 = vector.broadcast %cst_23 : f32 to vector<8x32xf32>
    %40 = arith.addf %39, %38 : vector<8x32xf32>
    %41 = arith.divf %39, %40 : vector<8x32xf32>
    %42 = vector.extract_strided_slice %21 {offsets = [0, 256], sizes = [8, 32], strides = [1, 1]} : vector<8x384xf32> to vector<8x32xf32>
    %43 = vector.extract_strided_slice %25 {offsets = [0, 256], sizes = [8, 32], strides = [1, 1]} : vector<8x384xf32> to vector<8x32xf32>
    %44 = arith.mulf %33, %43 : vector<8x32xf32>
    %45 = arith.addf %42, %44 : vector<8x32xf32>
    %46 = math.tanh %45 : vector<8x32xf32>
    %47 = arith.subf %17, %46 : vector<8x32xf32>
    %48 = arith.mulf %41, %47 : vector<8x32xf32>
    %49 = arith.addf %46, %48 : vector<8x32xf32>
    %c1_i32 = arith.constant 1 : i32
    %c8_i32_24 = arith.constant 8 : i32
    %50 = arith.muli %c1_i32, %c8_i32_24 : i32
    %51 = tpu.assume_multiple %50, 8 : i32
    %52 = arith.index_cast %51 : i32 to index
    %c0_25 = arith.constant 0 : index
    %53 = vector.load %arg9[%52, %c0_25] : memref<64x384xf32, #tpu.memory_space<vmem>>, vector<8x384xf32>
    %54 = arith.truncf %49 : vector<8x32xf32> to vector<8x32xbf16>
    %cst_26 = arith.constant dense<0.000000e+00> : vector<8x384xf32>
    %55 = tpu.matmul %54, %16, %cst_26 {dimension_numbers = #tpu.dot_dimension_numbers<[1], [0], [0], [1], [0, 0, 1, 1], [], []>} : vector<8x32xbf16>, vector<32x384xbf16>, vector<8x384xf32> -> vector<8x384xf32>
    %56 = vector.broadcast %1 : vector<1x384xf32> to vector<8x384xf32>
    %57 = arith.addf %55, %56 : vector<8x384xf32>
    %58 = vector.extract_strided_slice %53 {offsets = [0, 0], sizes = [8, 32], strides = [1, 1]} : vector<8x384xf32> to vector<8x32xf32>
    %59 = vector.extract_strided_slice %57 {offsets = [0, 0], sizes = [8, 32], strides = [1, 1]} : vector<8x384xf32> to vector<8x32xf32>
    %60 = arith.addf %58, %59 : vector<8x32xf32>
    %61 = arith.negf %60 : vector<8x32xf32>
    %62 = math.exp %61 : vector<8x32xf32>
    %cst_27 = arith.constant 1.000000e+00 : f32
    %63 = vector.broadcast %cst_27 : f32 to vector<8x32xf32>
    %64 = arith.addf %63, %62 : vector<8x32xf32>
    %65 = arith.divf %63, %64 : vector<8x32xf32>
    %66 = vector.extract_strided_slice %53 {offsets = [0, 128], sizes = [8, 32], strides = [1, 1]} : vector<8x384xf32> to vector<8x32xf32>
    %67 = vector.extract_strided_slice %57 {offsets = [0, 128], sizes = [8, 32], strides = [1, 1]} : vector<8x384xf32> to vector<8x32xf32>
    %68 = arith.addf %66, %67 : vector<8x32xf32>
    %69 = arith.negf %68 : vector<8x32xf32>
    %70 = math.exp %69 : vector<8x32xf32>
    %cst_28 = arith.constant 1.000000e+00 : f32
    %71 = vector.broadcast %cst_28 : f32 to vector<8x32xf32>
    %72 = arith.addf %71, %70 : vector<8x32xf32>
    %73 = arith.divf %71, %72 : vector<8x32xf32>
    %74 = vector.extract_strided_slice %53 {offsets = [0, 256], sizes = [8, 32], strides = [1, 1]} : vector<8x384xf32> to vector<8x32xf32>
    %75 = vector.extract_strided_slice %57 {offsets = [0, 256], sizes = [8, 32], strides = [1, 1]} : vector<8x384xf32> to vector<8x32xf32>
    %76 = arith.mulf %65, %75 : vector<8x32xf32>
    %77 = arith.addf %74, %76 : vector<8x32xf32>
    %78 = math.tanh %77 : vector<8x32xf32>
    %79 = arith.subf %49, %78 : vector<8x32xf32>
    %80 = arith.mulf %73, %79 : vector<8x32xf32>
    %81 = arith.addf %78, %80 : vector<8x32xf32>
    %c2_i32 = arith.constant 2 : i32
    %c8_i32_29 = arith.constant 8 : i32
    %82 = arith.muli %c2_i32, %c8_i32_29 : i32
    %83 = tpu.assume_multiple %82, 8 : i32
    %84 = arith.index_cast %83 : i32 to index
    %c0_30 = arith.constant 0 : index
    %85 = vector.load %arg9[%84, %c0_30] : memref<64x384xf32, #tpu.memory_space<vmem>>, vector<8x384xf32>
    %86 = arith.truncf %81 : vector<8x32xf32> to vector<8x32xbf16>
    %cst_31 = arith.constant dense<0.000000e+00> : vector<8x384xf32>
    %87 = tpu.matmul %86, %16, %cst_31 {dimension_numbers = #tpu.dot_dimension_numbers<[1], [0], [0], [1], [0, 0, 1, 1], [], []>} : vector<8x32xbf16>, vector<32x384xbf16>, vector<8x384xf32> -> vector<8x384xf32>
    %88 = vector.broadcast %1 : vector<1x384xf32> to vector<8x384xf32>
    %89 = arith.addf %87, %88 : vector<8x384xf32>
    %90 = vector.extract_strided_slice %85 {offsets = [0, 0], sizes = [8, 32], strides = [1, 1]} : vector<8x384xf32> to vector<8x32xf32>
    %91 = vector.extract_strided_slice %89 {offsets = [0, 0], sizes = [8, 32], strides = [1, 1]} : vector<8x384xf32> to vector<8x32xf32>
    %92 = arith.addf %90, %91 : vector<8x32xf32>
    %93 = arith.negf %92 : vector<8x32xf32>
    %94 = math.exp %93 : vector<8x32xf32>
    %cst_32 = arith.constant 1.000000e+00 : f32
    %95 = vector.broadcast %cst_32 : f32 to vector<8x32xf32>
    %96 = arith.addf %95, %94 : vector<8x32xf32>
    %97 = arith.divf %95, %96 : vector<8x32xf32>
    %98 = vector.extract_strided_slice %85 {offsets = [0, 128], sizes = [8, 32], strides = [1, 1]} : vector<8x384xf32> to vector<8x32xf32>
    %99 = vector.extract_strided_slice %89 {offsets = [0, 128], sizes = [8, 32], strides = [1, 1]} : vector<8x384xf32> to vector<8x32xf32>
    %100 = arith.addf %98, %99 : vector<8x32xf32>
    %101 = arith.negf %100 : vector<8x32xf32>
    %102 = math.exp %101 : vector<8x32xf32>
    %cst_33 = arith.constant 1.000000e+00 : f32
    %103 = vector.broadcast %cst_33 : f32 to vector<8x32xf32>
    %104 = arith.addf %103, %102 : vector<8x32xf32>
    %105 = arith.divf %103, %104 : vector<8x32xf32>
    %106 = vector.extract_strided_slice %85 {offsets = [0, 256], sizes = [8, 32], strides = [1, 1]} : vector<8x384xf32> to vector<8x32xf32>
    %107 = vector.extract_strided_slice %89 {offsets = [0, 256], sizes = [8, 32], strides = [1, 1]} : vector<8x384xf32> to vector<8x32xf32>
    %108 = arith.mulf %97, %107 : vector<8x32xf32>
    %109 = arith.addf %106, %108 : vector<8x32xf32>
    %110 = math.tanh %109 : vector<8x32xf32>
    %111 = arith.subf %81, %110 : vector<8x32xf32>
    %112 = arith.mulf %105, %111 : vector<8x32xf32>
    %113 = arith.addf %110, %112 : vector<8x32xf32>
    %c3_i32 = arith.constant 3 : i32
    %c8_i32_34 = arith.constant 8 : i32
    %114 = arith.muli %c3_i32, %c8_i32_34 : i32
    %115 = tpu.assume_multiple %114, 8 : i32
    %116 = arith.index_cast %115 : i32 to index
    %c0_35 = arith.constant 0 : index
    %117 = vector.load %arg9[%116, %c0_35] : memref<64x384xf32, #tpu.memory_space<vmem>>, vector<8x384xf32>
    %118 = arith.truncf %113 : vector<8x32xf32> to vector<8x32xbf16>
    %cst_36 = arith.constant dense<0.000000e+00> : vector<8x384xf32>
    %119 = tpu.matmul %118, %16, %cst_36 {dimension_numbers = #tpu.dot_dimension_numbers<[1], [0], [0], [1], [0, 0, 1, 1], [], []>} : vector<8x32xbf16>, vector<32x384xbf16>, vector<8x384xf32> -> vector<8x384xf32>
    %120 = vector.broadcast %1 : vector<1x384xf32> to vector<8x384xf32>
    %121 = arith.addf %119, %120 : vector<8x384xf32>
    %122 = vector.extract_strided_slice %117 {offsets = [0, 0], sizes = [8, 32], strides = [1, 1]} : vector<8x384xf32> to vector<8x32xf32>
    %123 = vector.extract_strided_slice %121 {offsets = [0, 0], sizes = [8, 32], strides = [1, 1]} : vector<8x384xf32> to vector<8x32xf32>
    %124 = arith.addf %122, %123 : vector<8x32xf32>
    %125 = arith.negf %124 : vector<8x32xf32>
    %126 = math.exp %125 : vector<8x32xf32>
    %cst_37 = arith.constant 1.000000e+00 : f32
    %127 = vector.broadcast %cst_37 : f32 to vector<8x32xf32>
    %128 = arith.addf %127, %126 : vector<8x32xf32>
    %129 = arith.divf %127, %128 : vector<8x32xf32>
    %130 = vector.extract_strided_slice %117 {offsets = [0, 128], sizes = [8, 32], strides = [1, 1]} : vector<8x384xf32> to vector<8x32xf32>
    %131 = vector.extract_strided_slice %121 {offsets = [0, 128], sizes = [8, 32], strides = [1, 1]} : vector<8x384xf32> to vector<8x32xf32>
    %132 = arith.addf %130, %131 : vector<8x32xf32>
    %133 = arith.negf %132 : vector<8x32xf32>
    %134 = math.exp %133 : vector<8x32xf32>
    %cst_38 = arith.constant 1.000000e+00 : f32
    %135 = vector.broadcast %cst_38 : f32 to vector<8x32xf32>
    %136 = arith.addf %135, %134 : vector<8x32xf32>
    %137 = arith.divf %135, %136 : vector<8x32xf32>
    %138 = vector.extract_strided_slice %117 {offsets = [0, 256], sizes = [8, 32], strides = [1, 1]} : vector<8x384xf32> to vector<8x32xf32>
    %139 = vector.extract_strided_slice %121 {offsets = [0, 256], sizes = [8, 32], strides = [1, 1]} : vector<8x384xf32> to vector<8x32xf32>
    %140 = arith.mulf %129, %139 : vector<8x32xf32>
    %141 = arith.addf %138, %140 : vector<8x32xf32>
    %142 = math.tanh %141 : vector<8x32xf32>
    %143 = arith.subf %113, %142 : vector<8x32xf32>
    %144 = arith.mulf %137, %143 : vector<8x32xf32>
    %145 = arith.addf %142, %144 : vector<8x32xf32>
    %c4_i32 = arith.constant 4 : i32
    %c8_i32_39 = arith.constant 8 : i32
    %146 = arith.muli %c4_i32, %c8_i32_39 : i32
    %147 = tpu.assume_multiple %146, 8 : i32
    %148 = arith.index_cast %147 : i32 to index
    %c0_40 = arith.constant 0 : index
    %149 = vector.load %arg9[%148, %c0_40] : memref<64x384xf32, #tpu.memory_space<vmem>>, vector<8x384xf32>
    %150 = arith.truncf %145 : vector<8x32xf32> to vector<8x32xbf16>
    %cst_41 = arith.constant dense<0.000000e+00> : vector<8x384xf32>
    %151 = tpu.matmul %150, %16, %cst_41 {dimension_numbers = #tpu.dot_dimension_numbers<[1], [0], [0], [1], [0, 0, 1, 1], [], []>} : vector<8x32xbf16>, vector<32x384xbf16>, vector<8x384xf32> -> vector<8x384xf32>
    %152 = vector.broadcast %1 : vector<1x384xf32> to vector<8x384xf32>
    %153 = arith.addf %151, %152 : vector<8x384xf32>
    %154 = vector.extract_strided_slice %149 {offsets = [0, 0], sizes = [8, 32], strides = [1, 1]} : vector<8x384xf32> to vector<8x32xf32>
    %155 = vector.extract_strided_slice %153 {offsets = [0, 0], sizes = [8, 32], strides = [1, 1]} : vector<8x384xf32> to vector<8x32xf32>
    %156 = arith.addf %154, %155 : vector<8x32xf32>
    %157 = arith.negf %156 : vector<8x32xf32>
    %158 = math.exp %157 : vector<8x32xf32>
    %cst_42 = arith.constant 1.000000e+00 : f32
    %159 = vector.broadcast %cst_42 : f32 to vector<8x32xf32>
    %160 = arith.addf %159, %158 : vector<8x32xf32>
    %161 = arith.divf %159, %160 : vector<8x32xf32>
    %162 = vector.extract_strided_slice %149 {offsets = [0, 128], sizes = [8, 32], strides = [1, 1]} : vector<8x384xf32> to vector<8x32xf32>
    %163 = vector.extract_strided_slice %153 {offsets = [0, 128], sizes = [8, 32], strides = [1, 1]} : vector<8x384xf32> to vector<8x32xf32>
    %164 = arith.addf %162, %163 : vector<8x32xf32>
    %165 = arith.negf %164 : vector<8x32xf32>
    %166 = math.exp %165 : vector<8x32xf32>
    %cst_43 = arith.constant 1.000000e+00 : f32
    %167 = vector.broadcast %cst_43 : f32 to vector<8x32xf32>
    %168 = arith.addf %167, %166 : vector<8x32xf32>
    %169 = arith.divf %167, %168 : vector<8x32xf32>
    %170 = vector.extract_strided_slice %149 {offsets = [0, 256], sizes = [8, 32], strides = [1, 1]} : vector<8x384xf32> to vector<8x32xf32>
    %171 = vector.extract_strided_slice %153 {offsets = [0, 256], sizes = [8, 32], strides = [1, 1]} : vector<8x384xf32> to vector<8x32xf32>
    %172 = arith.mulf %161, %171 : vector<8x32xf32>
    %173 = arith.addf %170, %172 : vector<8x32xf32>
    %174 = math.tanh %173 : vector<8x32xf32>
    %175 = arith.subf %145, %174 : vector<8x32xf32>
    %176 = arith.mulf %169, %175 : vector<8x32xf32>
    %177 = arith.addf %174, %176 : vector<8x32xf32>
    %c5_i32 = arith.constant 5 : i32
    %c8_i32_44 = arith.constant 8 : i32
    %178 = arith.muli %c5_i32, %c8_i32_44 : i32
    %179 = tpu.assume_multiple %178, 8 : i32
    %180 = arith.index_cast %179 : i32 to index
    %c0_45 = arith.constant 0 : index
    %181 = vector.load %arg9[%180, %c0_45] : memref<64x384xf32, #tpu.memory_space<vmem>>, vector<8x384xf32>
    %182 = arith.truncf %177 : vector<8x32xf32> to vector<8x32xbf16>
    %cst_46 = arith.constant dense<0.000000e+00> : vector<8x384xf32>
    %183 = tpu.matmul %182, %16, %cst_46 {dimension_numbers = #tpu.dot_dimension_numbers<[1], [0], [0], [1], [0, 0, 1, 1], [], []>} : vector<8x32xbf16>, vector<32x384xbf16>, vector<8x384xf32> -> vector<8x384xf32>
    %184 = vector.broadcast %1 : vector<1x384xf32> to vector<8x384xf32>
    %185 = arith.addf %183, %184 : vector<8x384xf32>
    %186 = vector.extract_strided_slice %181 {offsets = [0, 0], sizes = [8, 32], strides = [1, 1]} : vector<8x384xf32> to vector<8x32xf32>
    %187 = vector.extract_strided_slice %185 {offsets = [0, 0], sizes = [8, 32], strides = [1, 1]} : vector<8x384xf32> to vector<8x32xf32>
    %188 = arith.addf %186, %187 : vector<8x32xf32>
    %189 = arith.negf %188 : vector<8x32xf32>
    %190 = math.exp %189 : vector<8x32xf32>
    %cst_47 = arith.constant 1.000000e+00 : f32
    %191 = vector.broadcast %cst_47 : f32 to vector<8x32xf32>
    %192 = arith.addf %191, %190 : vector<8x32xf32>
    %193 = arith.divf %191, %192 : vector<8x32xf32>
    %194 = vector.extract_strided_slice %181 {offsets = [0, 128], sizes = [8, 32], strides = [1, 1]} : vector<8x384xf32> to vector<8x32xf32>
    %195 = vector.extract_strided_slice %185 {offsets = [0, 128], sizes = [8, 32], strides = [1, 1]} : vector<8x384xf32> to vector<8x32xf32>
    %196 = arith.addf %194, %195 : vector<8x32xf32>
    %197 = arith.negf %196 : vector<8x32xf32>
    %198 = math.exp %197 : vector<8x32xf32>
    %cst_48 = arith.constant 1.000000e+00 : f32
    %199 = vector.broadcast %cst_48 : f32 to vector<8x32xf32>
    %200 = arith.addf %199, %198 : vector<8x32xf32>
    %201 = arith.divf %199, %200 : vector<8x32xf32>
    %202 = vector.extract_strided_slice %181 {offsets = [0, 256], sizes = [8, 32], strides = [1, 1]} : vector<8x384xf32> to vector<8x32xf32>
    %203 = vector.extract_strided_slice %185 {offsets = [0, 256], sizes = [8, 32], strides = [1, 1]} : vector<8x384xf32> to vector<8x32xf32>
    %204 = arith.mulf %193, %203 : vector<8x32xf32>
    %205 = arith.addf %202, %204 : vector<8x32xf32>
    %206 = math.tanh %205 : vector<8x32xf32>
    %207 = arith.subf %177, %206 : vector<8x32xf32>
    %208 = arith.mulf %201, %207 : vector<8x32xf32>
    %209 = arith.addf %206, %208 : vector<8x32xf32>
    %c6_i32 = arith.constant 6 : i32
    %c8_i32_49 = arith.constant 8 : i32
    %210 = arith.muli %c6_i32, %c8_i32_49 : i32
    %211 = tpu.assume_multiple %210, 8 : i32
    %212 = arith.index_cast %211 : i32 to index
    %c0_50 = arith.constant 0 : index
    %213 = vector.load %arg9[%212, %c0_50] : memref<64x384xf32, #tpu.memory_space<vmem>>, vector<8x384xf32>
    %214 = arith.truncf %209 : vector<8x32xf32> to vector<8x32xbf16>
    %cst_51 = arith.constant dense<0.000000e+00> : vector<8x384xf32>
    %215 = tpu.matmul %214, %16, %cst_51 {dimension_numbers = #tpu.dot_dimension_numbers<[1], [0], [0], [1], [0, 0, 1, 1], [], []>} : vector<8x32xbf16>, vector<32x384xbf16>, vector<8x384xf32> -> vector<8x384xf32>
    %216 = vector.broadcast %1 : vector<1x384xf32> to vector<8x384xf32>
    %217 = arith.addf %215, %216 : vector<8x384xf32>
    %218 = vector.extract_strided_slice %213 {offsets = [0, 0], sizes = [8, 32], strides = [1, 1]} : vector<8x384xf32> to vector<8x32xf32>
    %219 = vector.extract_strided_slice %217 {offsets = [0, 0], sizes = [8, 32], strides = [1, 1]} : vector<8x384xf32> to vector<8x32xf32>
    %220 = arith.addf %218, %219 : vector<8x32xf32>
    %221 = arith.negf %220 : vector<8x32xf32>
    %222 = math.exp %221 : vector<8x32xf32>
    %cst_52 = arith.constant 1.000000e+00 : f32
    %223 = vector.broadcast %cst_52 : f32 to vector<8x32xf32>
    %224 = arith.addf %223, %222 : vector<8x32xf32>
    %225 = arith.divf %223, %224 : vector<8x32xf32>
    %226 = vector.extract_strided_slice %213 {offsets = [0, 128], sizes = [8, 32], strides = [1, 1]} : vector<8x384xf32> to vector<8x32xf32>
    %227 = vector.extract_strided_slice %217 {offsets = [0, 128], sizes = [8, 32], strides = [1, 1]} : vector<8x384xf32> to vector<8x32xf32>
    %228 = arith.addf %226, %227 : vector<8x32xf32>
    %229 = arith.negf %228 : vector<8x32xf32>
    %230 = math.exp %229 : vector<8x32xf32>
    %cst_53 = arith.constant 1.000000e+00 : f32
    %231 = vector.broadcast %cst_53 : f32 to vector<8x32xf32>
    %232 = arith.addf %231, %230 : vector<8x32xf32>
    %233 = arith.divf %231, %232 : vector<8x32xf32>
    %234 = vector.extract_strided_slice %213 {offsets = [0, 256], sizes = [8, 32], strides = [1, 1]} : vector<8x384xf32> to vector<8x32xf32>
    %235 = vector.extract_strided_slice %217 {offsets = [0, 256], sizes = [8, 32], strides = [1, 1]} : vector<8x384xf32> to vector<8x32xf32>
    %236 = arith.mulf %225, %235 : vector<8x32xf32>
    %237 = arith.addf %234, %236 : vector<8x32xf32>
    %238 = math.tanh %237 : vector<8x32xf32>
    %239 = arith.subf %209, %238 : vector<8x32xf32>
    %240 = arith.mulf %233, %239 : vector<8x32xf32>
    %241 = arith.addf %238, %240 : vector<8x32xf32>
    %c7_i32 = arith.constant 7 : i32
    %c8_i32_54 = arith.constant 8 : i32
    %242 = arith.muli %c7_i32, %c8_i32_54 : i32
    %243 = tpu.assume_multiple %242, 8 : i32
    %244 = arith.index_cast %243 : i32 to index
    %c0_55 = arith.constant 0 : index
    %245 = vector.load %arg9[%244, %c0_55] : memref<64x384xf32, #tpu.memory_space<vmem>>, vector<8x384xf32>
    %246 = arith.truncf %241 : vector<8x32xf32> to vector<8x32xbf16>
    %cst_56 = arith.constant dense<0.000000e+00> : vector<8x384xf32>
    %247 = tpu.matmul %246, %16, %cst_56 {dimension_numbers = #tpu.dot_dimension_numbers<[1], [0], [0], [1], [0, 0, 1, 1], [], []>} : vector<8x32xbf16>, vector<32x384xbf16>, vector<8x384xf32> -> vector<8x384xf32>
    %248 = vector.broadcast %1 : vector<1x384xf32> to vector<8x384xf32>
    %249 = arith.addf %247, %248 : vector<8x384xf32>
    %250 = vector.extract_strided_slice %245 {offsets = [0, 0], sizes = [8, 32], strides = [1, 1]} : vector<8x384xf32> to vector<8x32xf32>
    %251 = vector.extract_strided_slice %249 {offsets = [0, 0], sizes = [8, 32], strides = [1, 1]} : vector<8x384xf32> to vector<8x32xf32>
    %252 = arith.addf %250, %251 : vector<8x32xf32>
    %253 = arith.negf %252 : vector<8x32xf32>
    %254 = math.exp %253 : vector<8x32xf32>
    %cst_57 = arith.constant 1.000000e+00 : f32
    %255 = vector.broadcast %cst_57 : f32 to vector<8x32xf32>
    %256 = arith.addf %255, %254 : vector<8x32xf32>
    %257 = arith.divf %255, %256 : vector<8x32xf32>
    %258 = vector.extract_strided_slice %245 {offsets = [0, 128], sizes = [8, 32], strides = [1, 1]} : vector<8x384xf32> to vector<8x32xf32>
    %259 = vector.extract_strided_slice %249 {offsets = [0, 128], sizes = [8, 32], strides = [1, 1]} : vector<8x384xf32> to vector<8x32xf32>
    %260 = arith.addf %258, %259 : vector<8x32xf32>
    %261 = arith.negf %260 : vector<8x32xf32>
    %262 = math.exp %261 : vector<8x32xf32>
    %cst_58 = arith.constant 1.000000e+00 : f32
    %263 = vector.broadcast %cst_58 : f32 to vector<8x32xf32>
    %264 = arith.addf %263, %262 : vector<8x32xf32>
    %265 = arith.divf %263, %264 : vector<8x32xf32>
    %266 = vector.extract_strided_slice %245 {offsets = [0, 256], sizes = [8, 32], strides = [1, 1]} : vector<8x384xf32> to vector<8x32xf32>
    %267 = vector.extract_strided_slice %249 {offsets = [0, 256], sizes = [8, 32], strides = [1, 1]} : vector<8x384xf32> to vector<8x32xf32>
    %268 = arith.mulf %257, %267 : vector<8x32xf32>
    %269 = arith.addf %266, %268 : vector<8x32xf32>
    %270 = math.tanh %269 : vector<8x32xf32>
    %271 = arith.subf %241, %270 : vector<8x32xf32>
    %272 = arith.mulf %265, %271 : vector<8x32xf32>
    %273 = arith.addf %270, %272 : vector<8x32xf32>
    %c8_i32_59 = arith.constant 8 : i32
    %c0_60 = arith.constant 0 : index
    %c0_61 = arith.constant 0 : index
    %274 = vector.load %arg5[%c0_60, %c0_61] : memref<32x384xbf16, #tpu.memory_space<vmem>>, vector<32x384xbf16>
    %c0_i32_62 = arith.constant 0 : i32
    %c8_i32_63 = arith.constant 8 : i32
    %275 = arith.muli %c0_i32_62, %c8_i32_63 : i32
    %276 = tpu.assume_multiple %275, 8 : i32
    %277 = arith.index_cast %276 : i32 to index
    %c0_64 = arith.constant 0 : index
    %278 = vector.load %arg10[%277, %c0_64] : memref<56x384xf32, #tpu.memory_space<vmem>>, vector<8x384xf32>
    %279 = arith.truncf %273 : vector<8x32xf32> to vector<8x32xbf16>
    %cst_65 = arith.constant dense<0.000000e+00> : vector<8x384xf32>
    %280 = tpu.matmul %279, %274, %cst_65 {dimension_numbers = #tpu.dot_dimension_numbers<[1], [0], [0], [1], [0, 0, 1, 1], [], []>} : vector<8x32xbf16>, vector<32x384xbf16>, vector<8x384xf32> -> vector<8x384xf32>
    %281 = vector.broadcast %3 : vector<1x384xf32> to vector<8x384xf32>
    %282 = arith.addf %280, %281 : vector<8x384xf32>
    %283 = vector.extract_strided_slice %278 {offsets = [0, 0], sizes = [8, 32], strides = [1, 1]} : vector<8x384xf32> to vector<8x32xf32>
    %284 = vector.extract_strided_slice %282 {offsets = [0, 0], sizes = [8, 32], strides = [1, 1]} : vector<8x384xf32> to vector<8x32xf32>
    %285 = arith.addf %283, %284 : vector<8x32xf32>
    %286 = arith.negf %285 : vector<8x32xf32>
    %287 = math.exp %286 : vector<8x32xf32>
    %cst_66 = arith.constant 1.000000e+00 : f32
    %288 = vector.broadcast %cst_66 : f32 to vector<8x32xf32>
    %289 = arith.addf %288, %287 : vector<8x32xf32>
    %290 = arith.divf %288, %289 : vector<8x32xf32>
    %291 = vector.extract_strided_slice %278 {offsets = [0, 128], sizes = [8, 32], strides = [1, 1]} : vector<8x384xf32> to vector<8x32xf32>
    %292 = vector.extract_strided_slice %282 {offsets = [0, 128], sizes = [8, 32], strides = [1, 1]} : vector<8x384xf32> to vector<8x32xf32>
    %293 = arith.addf %291, %292 : vector<8x32xf32>
    %294 = arith.negf %293 : vector<8x32xf32>
    %295 = math.exp %294 : vector<8x32xf32>
    %cst_67 = arith.constant 1.000000e+00 : f32
    %296 = vector.broadcast %cst_67 : f32 to vector<8x32xf32>
    %297 = arith.addf %296, %295 : vector<8x32xf32>
    %298 = arith.divf %296, %297 : vector<8x32xf32>
    %299 = vector.extract_strided_slice %278 {offsets = [0, 256], sizes = [8, 32], strides = [1, 1]} : vector<8x384xf32> to vector<8x32xf32>
    %300 = vector.extract_strided_slice %282 {offsets = [0, 256], sizes = [8, 32], strides = [1, 1]} : vector<8x384xf32> to vector<8x32xf32>
    %301 = arith.mulf %290, %300 : vector<8x32xf32>
    %302 = arith.addf %299, %301 : vector<8x32xf32>
    %303 = math.tanh %302 : vector<8x32xf32>
    %304 = arith.subf %273, %303 : vector<8x32xf32>
    %305 = arith.mulf %298, %304 : vector<8x32xf32>
    %306 = arith.addf %303, %305 : vector<8x32xf32>
    %307 = arith.index_cast %276 : i32 to index
    %c0_68 = arith.constant 0 : index
    %308 = vector.load %arg11[%307, %c0_68] : memref<56x32xf32, #tpu.memory_space<vmem>>, vector<8x32xf32>
    tpu.vector_store %arg11[%307, %c0_68], %306 {strides = array<i32>} : memref<56x32xf32, #tpu.memory_space<vmem>>, vector<8x32xf32>,
    %c1_i32_69 = arith.constant 1 : i32
    %c8_i32_70 = arith.constant 8 : i32
    %309 = arith.muli %c1_i32_69, %c8_i32_70 : i32
    %310 = tpu.assume_multiple %309, 8 : i32
    %311 = arith.index_cast %310 : i32 to index
    %c0_71 = arith.constant 0 : index
    %312 = vector.load %arg10[%311, %c0_71] : memref<56x384xf32, #tpu.memory_space<vmem>>, vector<8x384xf32>
    %313 = arith.truncf %306 : vector<8x32xf32> to vector<8x32xbf16>
    %cst_72 = arith.constant dense<0.000000e+00> : vector<8x384xf32>
    %314 = tpu.matmul %313, %274, %cst_72 {dimension_numbers = #tpu.dot_dimension_numbers<[1], [0], [0], [1], [0, 0, 1, 1], [], []>} : vector<8x32xbf16>, vector<32x384xbf16>, vector<8x384xf32> -> vector<8x384xf32>
    %315 = vector.broadcast %3 : vector<1x384xf32> to vector<8x384xf32>
    %316 = arith.addf %314, %315 : vector<8x384xf32>
    %317 = vector.extract_strided_slice %312 {offsets = [0, 0], sizes = [8, 32], strides = [1, 1]} : vector<8x384xf32> to vector<8x32xf32>
    %318 = vector.extract_strided_slice %316 {offsets = [0, 0], sizes = [8, 32], strides = [1, 1]} : vector<8x384xf32> to vector<8x32xf32>
    %319 = arith.addf %317, %318 : vector<8x32xf32>
    %320 = arith.negf %319 : vector<8x32xf32>
    %321 = math.exp %320 : vector<8x32xf32>
    %cst_73 = arith.constant 1.000000e+00 : f32
    %322 = vector.broadcast %cst_73 : f32 to vector<8x32xf32>
    %323 = arith.addf %322, %321 : vector<8x32xf32>
    %324 = arith.divf %322, %323 : vector<8x32xf32>
    %325 = vector.extract_strided_slice %312 {offsets = [0, 128], sizes = [8, 32], strides = [1, 1]} : vector<8x384xf32> to vector<8x32xf32>
    %326 = vector.extract_strided_slice %316 {offsets = [0, 128], sizes = [8, 32], strides = [1, 1]} : vector<8x384xf32> to vector<8x32xf32>
    %327 = arith.addf %325, %326 : vector<8x32xf32>
    %328 = arith.negf %327 : vector<8x32xf32>
    %329 = math.exp %328 : vector<8x32xf32>
    %cst_74 = arith.constant 1.000000e+00 : f32
    %330 = vector.broadcast %cst_74 : f32 to vector<8x32xf32>
    %331 = arith.addf %330, %329 : vector<8x32xf32>
    %332 = arith.divf %330, %331 : vector<8x32xf32>
    %333 = vector.extract_strided_slice %312 {offsets = [0, 256], sizes = [8, 32], strides = [1, 1]} : vector<8x384xf32> to vector<8x32xf32>
    %334 = vector.extract_strided_slice %316 {offsets = [0, 256], sizes = [8, 32], strides = [1, 1]} : vector<8x384xf32> to vector<8x32xf32>
    %335 = arith.mulf %324, %334 : vector<8x32xf32>
    %336 = arith.addf %333, %335 : vector<8x32xf32>
    %337 = math.tanh %336 : vector<8x32xf32>
    %338 = arith.subf %306, %337 : vector<8x32xf32>
    %339 = arith.mulf %332, %338 : vector<8x32xf32>
    %340 = arith.addf %337, %339 : vector<8x32xf32>
    %341 = arith.index_cast %310 : i32 to index
    %c0_75 = arith.constant 0 : index
    %342 = vector.load %arg11[%341, %c0_75] : memref<56x32xf32, #tpu.memory_space<vmem>>, vector<8x32xf32>
    tpu.vector_store %arg11[%341, %c0_75], %340 {strides = array<i32>} : memref<56x32xf32, #tpu.memory_space<vmem>>, vector<8x32xf32>,
    %c2_i32_76 = arith.constant 2 : i32
    %c8_i32_77 = arith.constant 8 : i32
    %343 = arith.muli %c2_i32_76, %c8_i32_77 : i32
    %344 = tpu.assume_multiple %343, 8 : i32
    %345 = arith.index_cast %344 : i32 to index
    %c0_78 = arith.constant 0 : index
    %346 = vector.load %arg10[%345, %c0_78] : memref<56x384xf32, #tpu.memory_space<vmem>>, vector<8x384xf32>
    %347 = arith.truncf %340 : vector<8x32xf32> to vector<8x32xbf16>
    %cst_79 = arith.constant dense<0.000000e+00> : vector<8x384xf32>
    %348 = tpu.matmul %347, %274, %cst_79 {dimension_numbers = #tpu.dot_dimension_numbers<[1], [0], [0], [1], [0, 0, 1, 1], [], []>} : vector<8x32xbf16>, vector<32x384xbf16>, vector<8x384xf32> -> vector<8x384xf32>
    %349 = vector.broadcast %3 : vector<1x384xf32> to vector<8x384xf32>
    %350 = arith.addf %348, %349 : vector<8x384xf32>
    %351 = vector.extract_strided_slice %346 {offsets = [0, 0], sizes = [8, 32], strides = [1, 1]} : vector<8x384xf32> to vector<8x32xf32>
    %352 = vector.extract_strided_slice %350 {offsets = [0, 0], sizes = [8, 32], strides = [1, 1]} : vector<8x384xf32> to vector<8x32xf32>
    %353 = arith.addf %351, %352 : vector<8x32xf32>
    %354 = arith.negf %353 : vector<8x32xf32>
    %355 = math.exp %354 : vector<8x32xf32>
    %cst_80 = arith.constant 1.000000e+00 : f32
    %356 = vector.broadcast %cst_80 : f32 to vector<8x32xf32>
    %357 = arith.addf %356, %355 : vector<8x32xf32>
    %358 = arith.divf %356, %357 : vector<8x32xf32>
    %359 = vector.extract_strided_slice %346 {offsets = [0, 128], sizes = [8, 32], strides = [1, 1]} : vector<8x384xf32> to vector<8x32xf32>
    %360 = vector.extract_strided_slice %350 {offsets = [0, 128], sizes = [8, 32], strides = [1, 1]} : vector<8x384xf32> to vector<8x32xf32>
    %361 = arith.addf %359, %360 : vector<8x32xf32>
    %362 = arith.negf %361 : vector<8x32xf32>
    %363 = math.exp %362 : vector<8x32xf32>
    %cst_81 = arith.constant 1.000000e+00 : f32
    %364 = vector.broadcast %cst_81 : f32 to vector<8x32xf32>
    %365 = arith.addf %364, %363 : vector<8x32xf32>
    %366 = arith.divf %364, %365 : vector<8x32xf32>
    %367 = vector.extract_strided_slice %346 {offsets = [0, 256], sizes = [8, 32], strides = [1, 1]} : vector<8x384xf32> to vector<8x32xf32>
    %368 = vector.extract_strided_slice %350 {offsets = [0, 256], sizes = [8, 32], strides = [1, 1]} : vector<8x384xf32> to vector<8x32xf32>
    %369 = arith.mulf %358, %368 : vector<8x32xf32>
    %370 = arith.addf %367, %369 : vector<8x32xf32>
    %371 = math.tanh %370 : vector<8x32xf32>
    %372 = arith.subf %340, %371 : vector<8x32xf32>
    %373 = arith.mulf %366, %372 : vector<8x32xf32>
    %374 = arith.addf %371, %373 : vector<8x32xf32>
    %375 = arith.index_cast %344 : i32 to index
    %c0_82 = arith.constant 0 : index
    %376 = vector.load %arg11[%375, %c0_82] : memref<56x32xf32, #tpu.memory_space<vmem>>, vector<8x32xf32>
    tpu.vector_store %arg11[%375, %c0_82], %374 {strides = array<i32>} : memref<56x32xf32, #tpu.memory_space<vmem>>, vector<8x32xf32>,
    %c3_i32_83 = arith.constant 3 : i32
    %c8_i32_84 = arith.constant 8 : i32
    %377 = arith.muli %c3_i32_83, %c8_i32_84 : i32
    %378 = tpu.assume_multiple %377, 8 : i32
    %379 = arith.index_cast %378 : i32 to index
    %c0_85 = arith.constant 0 : index
    %380 = vector.load %arg10[%379, %c0_85] : memref<56x384xf32, #tpu.memory_space<vmem>>, vector<8x384xf32>
    %381 = arith.truncf %374 : vector<8x32xf32> to vector<8x32xbf16>
    %cst_86 = arith.constant dense<0.000000e+00> : vector<8x384xf32>
    %382 = tpu.matmul %381, %274, %cst_86 {dimension_numbers = #tpu.dot_dimension_numbers<[1], [0], [0], [1], [0, 0, 1, 1], [], []>} : vector<8x32xbf16>, vector<32x384xbf16>, vector<8x384xf32> -> vector<8x384xf32>
    %383 = vector.broadcast %3 : vector<1x384xf32> to vector<8x384xf32>
    %384 = arith.addf %382, %383 : vector<8x384xf32>
    %385 = vector.extract_strided_slice %380 {offsets = [0, 0], sizes = [8, 32], strides = [1, 1]} : vector<8x384xf32> to vector<8x32xf32>
    %386 = vector.extract_strided_slice %384 {offsets = [0, 0], sizes = [8, 32], strides = [1, 1]} : vector<8x384xf32> to vector<8x32xf32>
    %387 = arith.addf %385, %386 : vector<8x32xf32>
    %388 = arith.negf %387 : vector<8x32xf32>
    %389 = math.exp %388 : vector<8x32xf32>
    %cst_87 = arith.constant 1.000000e+00 : f32
    %390 = vector.broadcast %cst_87 : f32 to vector<8x32xf32>
    %391 = arith.addf %390, %389 : vector<8x32xf32>
    %392 = arith.divf %390, %391 : vector<8x32xf32>
    %393 = vector.extract_strided_slice %380 {offsets = [0, 128], sizes = [8, 32], strides = [1, 1]} : vector<8x384xf32> to vector<8x32xf32>
    %394 = vector.extract_strided_slice %384 {offsets = [0, 128], sizes = [8, 32], strides = [1, 1]} : vector<8x384xf32> to vector<8x32xf32>
    %395 = arith.addf %393, %394 : vector<8x32xf32>
    %396 = arith.negf %395 : vector<8x32xf32>
    %397 = math.exp %396 : vector<8x32xf32>
    %cst_88 = arith.constant 1.000000e+00 : f32
    %398 = vector.broadcast %cst_88 : f32 to vector<8x32xf32>
    %399 = arith.addf %398, %397 : vector<8x32xf32>
    %400 = arith.divf %398, %399 : vector<8x32xf32>
    %401 = vector.extract_strided_slice %380 {offsets = [0, 256], sizes = [8, 32], strides = [1, 1]} : vector<8x384xf32> to vector<8x32xf32>
    %402 = vector.extract_strided_slice %384 {offsets = [0, 256], sizes = [8, 32], strides = [1, 1]} : vector<8x384xf32> to vector<8x32xf32>
    %403 = arith.mulf %392, %402 : vector<8x32xf32>
    %404 = arith.addf %401, %403 : vector<8x32xf32>
    %405 = math.tanh %404 : vector<8x32xf32>
    %406 = arith.subf %374, %405 : vector<8x32xf32>
    %407 = arith.mulf %400, %406 : vector<8x32xf32>
    %408 = arith.addf %405, %407 : vector<8x32xf32>
    %409 = arith.index_cast %378 : i32 to index
    %c0_89 = arith.constant 0 : index
    %410 = vector.load %arg11[%409, %c0_89] : memref<56x32xf32, #tpu.memory_space<vmem>>, vector<8x32xf32>
    tpu.vector_store %arg11[%409, %c0_89], %408 {strides = array<i32>} : memref<56x32xf32, #tpu.memory_space<vmem>>, vector<8x32xf32>,
    %c4_i32_90 = arith.constant 4 : i32
    %c8_i32_91 = arith.constant 8 : i32
    %411 = arith.muli %c4_i32_90, %c8_i32_91 : i32
    %412 = tpu.assume_multiple %411, 8 : i32
    %413 = arith.index_cast %412 : i32 to index
    %c0_92 = arith.constant 0 : index
    %414 = vector.load %arg10[%413, %c0_92] : memref<56x384xf32, #tpu.memory_space<vmem>>, vector<8x384xf32>
    %415 = arith.truncf %408 : vector<8x32xf32> to vector<8x32xbf16>
    %cst_93 = arith.constant dense<0.000000e+00> : vector<8x384xf32>
    %416 = tpu.matmul %415, %274, %cst_93 {dimension_numbers = #tpu.dot_dimension_numbers<[1], [0], [0], [1], [0, 0, 1, 1], [], []>} : vector<8x32xbf16>, vector<32x384xbf16>, vector<8x384xf32> -> vector<8x384xf32>
    %417 = vector.broadcast %3 : vector<1x384xf32> to vector<8x384xf32>
    %418 = arith.addf %416, %417 : vector<8x384xf32>
    %419 = vector.extract_strided_slice %414 {offsets = [0, 0], sizes = [8, 32], strides = [1, 1]} : vector<8x384xf32> to vector<8x32xf32>
    %420 = vector.extract_strided_slice %418 {offsets = [0, 0], sizes = [8, 32], strides = [1, 1]} : vector<8x384xf32> to vector<8x32xf32>
    %421 = arith.addf %419, %420 : vector<8x32xf32>
    %422 = arith.negf %421 : vector<8x32xf32>
    %423 = math.exp %422 : vector<8x32xf32>
    %cst_94 = arith.constant 1.000000e+00 : f32
    %424 = vector.broadcast %cst_94 : f32 to vector<8x32xf32>
    %425 = arith.addf %424, %423 : vector<8x32xf32>
    %426 = arith.divf %424, %425 : vector<8x32xf32>
    %427 = vector.extract_strided_slice %414 {offsets = [0, 128], sizes = [8, 32], strides = [1, 1]} : vector<8x384xf32> to vector<8x32xf32>
    %428 = vector.extract_strided_slice %418 {offsets = [0, 128], sizes = [8, 32], strides = [1, 1]} : vector<8x384xf32> to vector<8x32xf32>
    %429 = arith.addf %427, %428 : vector<8x32xf32>
    %430 = arith.negf %429 : vector<8x32xf32>
    %431 = math.exp %430 : vector<8x32xf32>
    %cst_95 = arith.constant 1.000000e+00 : f32
    %432 = vector.broadcast %cst_95 : f32 to vector<8x32xf32>
    %433 = arith.addf %432, %431 : vector<8x32xf32>
    %434 = arith.divf %432, %433 : vector<8x32xf32>
    %435 = vector.extract_strided_slice %414 {offsets = [0, 256], sizes = [8, 32], strides = [1, 1]} : vector<8x384xf32> to vector<8x32xf32>
    %436 = vector.extract_strided_slice %418 {offsets = [0, 256], sizes = [8, 32], strides = [1, 1]} : vector<8x384xf32> to vector<8x32xf32>
    %437 = arith.mulf %426, %436 : vector<8x32xf32>
    %438 = arith.addf %435, %437 : vector<8x32xf32>
    %439 = math.tanh %438 : vector<8x32xf32>
    %440 = arith.subf %408, %439 : vector<8x32xf32>
    %441 = arith.mulf %434, %440 : vector<8x32xf32>
    %442 = arith.addf %439, %441 : vector<8x32xf32>
    %443 = arith.index_cast %412 : i32 to index
    %c0_96 = arith.constant 0 : index
    %444 = vector.load %arg11[%443, %c0_96] : memref<56x32xf32, #tpu.memory_space<vmem>>, vector<8x32xf32>
    tpu.vector_store %arg11[%443, %c0_96], %442 {strides = array<i32>} : memref<56x32xf32, #tpu.memory_space<vmem>>, vector<8x32xf32>,
    %c5_i32_97 = arith.constant 5 : i32
    %c8_i32_98 = arith.constant 8 : i32
    %445 = arith.muli %c5_i32_97, %c8_i32_98 : i32
    %446 = tpu.assume_multiple %445, 8 : i32
    %447 = arith.index_cast %446 : i32 to index
    %c0_99 = arith.constant 0 : index
    %448 = vector.load %arg10[%447, %c0_99] : memref<56x384xf32, #tpu.memory_space<vmem>>, vector<8x384xf32>
    %449 = arith.truncf %442 : vector<8x32xf32> to vector<8x32xbf16>
    %cst_100 = arith.constant dense<0.000000e+00> : vector<8x384xf32>
    %450 = tpu.matmul %449, %274, %cst_100 {dimension_numbers = #tpu.dot_dimension_numbers<[1], [0], [0], [1], [0, 0, 1, 1], [], []>} : vector<8x32xbf16>, vector<32x384xbf16>, vector<8x384xf32> -> vector<8x384xf32>
    %451 = vector.broadcast %3 : vector<1x384xf32> to vector<8x384xf32>
    %452 = arith.addf %450, %451 : vector<8x384xf32>
    %453 = vector.extract_strided_slice %448 {offsets = [0, 0], sizes = [8, 32], strides = [1, 1]} : vector<8x384xf32> to vector<8x32xf32>
    %454 = vector.extract_strided_slice %452 {offsets = [0, 0], sizes = [8, 32], strides = [1, 1]} : vector<8x384xf32> to vector<8x32xf32>
    %455 = arith.addf %453, %454 : vector<8x32xf32>
    %456 = arith.negf %455 : vector<8x32xf32>
    %457 = math.exp %456 : vector<8x32xf32>
    %cst_101 = arith.constant 1.000000e+00 : f32
    %458 = vector.broadcast %cst_101 : f32 to vector<8x32xf32>
    %459 = arith.addf %458, %457 : vector<8x32xf32>
    %460 = arith.divf %458, %459 : vector<8x32xf32>
    %461 = vector.extract_strided_slice %448 {offsets = [0, 128], sizes = [8, 32], strides = [1, 1]} : vector<8x384xf32> to vector<8x32xf32>
    %462 = vector.extract_strided_slice %452 {offsets = [0, 128], sizes = [8, 32], strides = [1, 1]} : vector<8x384xf32> to vector<8x32xf32>
    %463 = arith.addf %461, %462 : vector<8x32xf32>
    %464 = arith.negf %463 : vector<8x32xf32>
    %465 = math.exp %464 : vector<8x32xf32>
    %cst_102 = arith.constant 1.000000e+00 : f32
    %466 = vector.broadcast %cst_102 : f32 to vector<8x32xf32>
    %467 = arith.addf %466, %465 : vector<8x32xf32>
    %468 = arith.divf %466, %467 : vector<8x32xf32>
    %469 = vector.extract_strided_slice %448 {offsets = [0, 256], sizes = [8, 32], strides = [1, 1]} : vector<8x384xf32> to vector<8x32xf32>
    %470 = vector.extract_strided_slice %452 {offsets = [0, 256], sizes = [8, 32], strides = [1, 1]} : vector<8x384xf32> to vector<8x32xf32>
    %471 = arith.mulf %460, %470 : vector<8x32xf32>
    %472 = arith.addf %469, %471 : vector<8x32xf32>
    %473 = math.tanh %472 : vector<8x32xf32>
    %474 = arith.subf %442, %473 : vector<8x32xf32>
    %475 = arith.mulf %468, %474 : vector<8x32xf32>
    %476 = arith.addf %473, %475 : vector<8x32xf32>
    %477 = arith.index_cast %446 : i32 to index
    %c0_103 = arith.constant 0 : index
    %478 = vector.load %arg11[%477, %c0_103] : memref<56x32xf32, #tpu.memory_space<vmem>>, vector<8x32xf32>
    tpu.vector_store %arg11[%477, %c0_103], %476 {strides = array<i32>} : memref<56x32xf32, #tpu.memory_space<vmem>>, vector<8x32xf32>,
    %c6_i32_104 = arith.constant 6 : i32
    %c8_i32_105 = arith.constant 8 : i32
    %479 = arith.muli %c6_i32_104, %c8_i32_105 : i32
    %480 = tpu.assume_multiple %479, 8 : i32
    %481 = arith.index_cast %480 : i32 to index
    %c0_106 = arith.constant 0 : index
    %482 = vector.load %arg10[%481, %c0_106] : memref<56x384xf32, #tpu.memory_space<vmem>>, vector<8x384xf32>
    %483 = arith.truncf %476 : vector<8x32xf32> to vector<8x32xbf16>
    %cst_107 = arith.constant dense<0.000000e+00> : vector<8x384xf32>
    %484 = tpu.matmul %483, %274, %cst_107 {dimension_numbers = #tpu.dot_dimension_numbers<[1], [0], [0], [1], [0, 0, 1, 1], [], []>} : vector<8x32xbf16>, vector<32x384xbf16>, vector<8x384xf32> -> vector<8x384xf32>
    %485 = vector.broadcast %3 : vector<1x384xf32> to vector<8x384xf32>
    %486 = arith.addf %484, %485 : vector<8x384xf32>
    %487 = vector.extract_strided_slice %482 {offsets = [0, 0], sizes = [8, 32], strides = [1, 1]} : vector<8x384xf32> to vector<8x32xf32>
    %488 = vector.extract_strided_slice %486 {offsets = [0, 0], sizes = [8, 32], strides = [1, 1]} : vector<8x384xf32> to vector<8x32xf32>
    %489 = arith.addf %487, %488 : vector<8x32xf32>
    %490 = arith.negf %489 : vector<8x32xf32>
    %491 = math.exp %490 : vector<8x32xf32>
    %cst_108 = arith.constant 1.000000e+00 : f32
    %492 = vector.broadcast %cst_108 : f32 to vector<8x32xf32>
    %493 = arith.addf %492, %491 : vector<8x32xf32>
    %494 = arith.divf %492, %493 : vector<8x32xf32>
    %495 = vector.extract_strided_slice %482 {offsets = [0, 128], sizes = [8, 32], strides = [1, 1]} : vector<8x384xf32> to vector<8x32xf32>
    %496 = vector.extract_strided_slice %486 {offsets = [0, 128], sizes = [8, 32], strides = [1, 1]} : vector<8x384xf32> to vector<8x32xf32>
    %497 = arith.addf %495, %496 : vector<8x32xf32>
    %498 = arith.negf %497 : vector<8x32xf32>
    %499 = math.exp %498 : vector<8x32xf32>
    %cst_109 = arith.constant 1.000000e+00 : f32
    %500 = vector.broadcast %cst_109 : f32 to vector<8x32xf32>
    %501 = arith.addf %500, %499 : vector<8x32xf32>
    %502 = arith.divf %500, %501 : vector<8x32xf32>
    %503 = vector.extract_strided_slice %482 {offsets = [0, 256], sizes = [8, 32], strides = [1, 1]} : vector<8x384xf32> to vector<8x32xf32>
    %504 = vector.extract_strided_slice %486 {offsets = [0, 256], sizes = [8, 32], strides = [1, 1]} : vector<8x384xf32> to vector<8x32xf32>
    %505 = arith.mulf %494, %504 : vector<8x32xf32>
    %506 = arith.addf %503, %505 : vector<8x32xf32>
    %507 = math.tanh %506 : vector<8x32xf32>
    %508 = arith.subf %476, %507 : vector<8x32xf32>
    %509 = arith.mulf %502, %508 : vector<8x32xf32>
    %510 = arith.addf %507, %509 : vector<8x32xf32>
    %511 = arith.index_cast %480 : i32 to index
    %c0_110 = arith.constant 0 : index
    %512 = vector.load %arg11[%511, %c0_110] : memref<56x32xf32, #tpu.memory_space<vmem>>, vector<8x32xf32>
    tpu.vector_store %arg11[%511, %c0_110], %510 {strides = array<i32>} : memref<56x32xf32, #tpu.memory_space<vmem>>, vector<8x32xf32>,
    %c7_i32_111 = arith.constant 7 : i32
    %c4 = arith.constant 4 : index
    %c0_112 = arith.constant 0 : index
    %513 = vector.load %arg7[%c4, %c0_112] : memref<8x384xf32, #tpu.memory_space<vmem>>, vector<1x128xf32>
    %c0_113 = arith.constant 0 : index
    %c0_114 = arith.constant 0 : index
    %514 = vector.load %arg11[%c0_113, %c0_114] : memref<56x32xf32, #tpu.memory_space<vmem>>, vector<56x32xf32>
    %515 = arith.truncf %514 : vector<56x32xf32> to vector<56x32xbf16>
    %c0_115 = arith.constant 0 : index
    %c0_116 = arith.constant 0 : index
    %516 = vector.load %arg6[%c0_115, %c0_116] : memref<32x128xbf16, #tpu.memory_space<vmem>>, vector<32x128xbf16>
    %cst_117 = arith.constant dense<0.000000e+00> : vector<56x128xf32>
    %517 = tpu.matmul %515, %516, %cst_117 {dimension_numbers = #tpu.dot_dimension_numbers<[1], [0], [0], [1], [0, 0, 1, 1], [], []>} : vector<56x32xbf16>, vector<32x128xbf16>, vector<56x128xf32> -> vector<56x128xf32>
    %518 = vector.broadcast %513 : vector<1x128xf32> to vector<56x128xf32>
    %519 = arith.addf %517, %518 : vector<56x128xf32>
    %cst_118 = arith.constant 0.000000e+00 : f32
    %520 = vector.broadcast %cst_118 : f32 to vector<8x128xf32>
    %c0_119 = arith.constant 0 : index
    %c0_120 = arith.constant 0 : index
    %521 = vector.load %arg8[%c0_119, %c0_120] : memref<64x128xf32, #tpu.memory_space<vmem>>, vector<8x128xf32>
    tpu.vector_store %arg8[%c0_119, %c0_120], %520 {strides = array<i32>} : memref<64x128xf32, #tpu.memory_space<vmem>>, vector<8x128xf32>,
    %c8 = arith.constant 8 : index
    %c0_121 = arith.constant 0 : index
    %522 = vector.load %arg8[%c8, %c0_121] : memref<64x128xf32, #tpu.memory_space<vmem>>, vector<56x128xf32>
    tpu.vector_store %arg8[%c8, %c0_121], %519 {strides = array<i32>} : memref<64x128xf32, #tpu.memory_space<vmem>>, vector<56x128xf32>,
    return
  }
}

</mosaic_0001>

<bundles_post_ra>
// kernel: clue2ans_forward.1
= control target key start
LH: loop header
LB: loop body
LE: loop exit
PB: predicated region body
PF: predicated region fallthrough
CT: control target
= control target key end

     0   :  { %vm112_vm0 = vcmask 261120   ;;  %v2466_v52 = vmov 0   ;;  %s3269_s2 = inlined_call_operand.vmem [shape: bf16[32,384], index: 2, kind: input, shape index: {}]   ;;  %s3270_s4 = inlined_call_operand.vmem [shape: bf16[32,384], index: 4, kind: input, shape index: {}]   ;;  %s3271_s0 = inlined_call_operand.vmem [shape: bf16[64,32], index: 0, kind: input, shape index: {}]   ;;  %s3272_s3 = inlined_call_operand.vmem [shape: bf16[32,384], index: 3, kind: input, shape index: {}]   ;;  %s3273_s1 = inlined_call_operand.vmem [shape: bf16[56,32], index: 1, kind: input, shape index: {}]   ;;  %s3274_s7 = inlined_call_operand.vmem [shape: f32[8,384], index: 7, kind: input, shape index: {}]   ;;  %s3275_s5 = inlined_call_operand.vmem [shape: bf16[32,384], index: 5, kind: input, shape index: {}]   ;;  %s3276_s6 = inlined_call_operand.vmem [shape: bf16[32,128], index: 6, kind: input, shape index: {}]   ;;  %s3277_s8 = inlined_call_operand.vmem [shape: f32[64,128], index: 8, kind: output, shape index: {}]  }
   0x1   :  { %v2284_v0 = vld [vmem:[%s3269_s2 + $0x1c] sm:$0xf]  ;;  %v2077_v1 = vld [vmem:[%s3269_s2 + $0x24] sm:$0xf0]  ;;  %v2281_v2 = vld [vmem:[%s3269_s2 + $0x4] sm:$0xf] }
   0x2   :  { %v2080_v3 = vor.u32 %v2284_v0, %v2077_v1  ;;  %v2065_v4 = vld [vmem:[%s3269_s2 + $0xc] sm:$0xf0]  ;;  %v2083_v5 = vld [vmem:[%s3269_s2 + $0x20] sm:$0xf]  ;;  %v2286_v6 = vld [vmem:[%s3269_s2 + $0x28] sm:$0xf0] }
   0x3   :  { %v2068_v7 = vor.u32 %v2281_v2, %v2065_v4  ;;  %v2123_v8 = vld [vmem:[%s3270_s4 + $0x18] sm:$0xf]  ;;  %v2084_v9 = vor.u32 %v2286_v6, %v2083_v5  ;;  %v2071_v10 = vld [vmem:[%s3269_s2 + $0x8] sm:$0xf]  ;;  %v2294_v11 = vld [vmem:[%s3270_s4 + $0x20] sm:$0xf0] }
   0x4   :  { %2310 = vmatpush.bf16.msra.mxu2 %v2080_v3  ;;  %2311 = vmatpush.bf16.msra.mxu3 %v2080_v3  ;;  %v2283_v12 = vld [vmem:[%s3269_s2 + $0x10] sm:$0xf0]  ;;  %v2124_v13 = vor.u32 %v2294_v11, %v2123_v8  ;;  %v2111_v14 = vld [vmem:[%s3270_s4] sm:$0xf]  ;;  %v2291_v15 = vld [vmem:[%s3270_s4 + $0x8] sm:$0xf0] }
   0x5   :  { %160 = vmatpush.bf16.msra.mxu1 %v2080_v3  ;;  %v2552_v16 = vld [vmem:[%s3271_s0 + $0x8] sm:$0xff]  ;;  %v2557_v17 = vld [vmem:[%s3271_s0 + $0x18] sm:$0xff]  ;;  %v2072_v18 = vor.u32 %v2283_v12, %v2071_v10  ;;  %v2112_v19 = vor.u32 %v2291_v15, %v2111_v14  ;;  %v2300_v21 = vld [vmem:[%s3272_s3 + $0x20] sm:$0xf0] }
   0x6   :  { %v2159_v20 = vld [vmem:[%s3272_s3 + $0x18] sm:$0xf]  ;;  %v2299_v22 = vld [vmem:[%s3272_s3 + $0x1c] sm:$0xf]  ;;  %v2277_v23 = vld [vmem:[%s3271_s0] sm:$0xff] }
   0x7   :  { %v2575_v24 = vor.u32 %v2300_v21, %v2159_v20  ;;  %v2161_v25 = vld [vmem:[%s3272_s3 + $0x24] sm:$0xf0]  ;;  %v2279_v27 = vld [vmem:[%s3271_s0 + $0x10] sm:$0xff]  ;;  %v2591_v28 = vld [vmem:[%s3273_s1] sm:$0xff] }
   0x8   :  { %2312 = vmatpush.bf16.msra.mxu2 %v2068_v7  ;;  %2313 = vmatpush.bf16.msra.mxu3 %v2068_v7  ;;  %v2580_v26 = vor.u32 %v2299_v22, %v2161_v25  ;;  %v2599_v29 = vld [vmem:[%s3273_s1 + $0x8] sm:$0xff]  ;;  %v2147_v30 = vld [vmem:[%s3272_s3] sm:$0xf]  ;;  %v2296_v32 = vld [vmem:[%s3272_s3 + $0x4] sm:$0xf] }
   0x9   :  { %161 = vmatpush.bf16.msra.mxu1 %v2068_v7  ;;  %v2297_v31 = vld [vmem:[%s3272_s3 + $0x8] sm:$0xf0]  ;;  %v2149_v34 = vld [vmem:[%s3272_s3 + $0xc] sm:$0xf0]  ;;  %v2075_v37 = vld [vmem:[%s3269_s2 + $0x18] sm:$0xf] }
   0xa   :  { %v2613_v33 = vor.u32 %v2297_v31, %v2147_v30  ;;  %v2618_v35 = vor.u32 %v2296_v32, %v2149_v34  ;;  %v2627_v36 = vld [vmem:[%s3273_s1 + $0x10] sm:$0xff]  ;;  %v2285_v38 = vld [vmem:[%s3269_s2 + $0x20] sm:$0xf0]  ;;  %v2063_v39 = vld [vmem:[%s3269_s2] sm:$0xf] }
   0xb   :  { %2090 = vmatmul.msk.bf16.vlgmr.msra.gmra.mxu2 %vm112_vm0, %v2552_v16  ;;  %2092 = vmatmul.msk.bf16.vlgmr.msra.gmra.mxu3 %vm112_vm0, %v2557_v17  ;;  %v2076_v40 = vor.u32 %v2285_v38, %v2075_v37  ;;  %v2282_v41 = vld [vmem:[%s3269_s2 + $0x8] sm:$0xf0]  ;;  %v242_v43 = vld [vmem:[%s3273_s1 + $0x18] sm:$0xf]  ;;  %v2167_v46 = vld [vmem:[%s3272_s3 + $0x20] sm:$0xf] }
   0xc   :  { %189 = vmatpush.bf16.msrb.mxu2 %v2084_v9  ;;  %326 = vmatpush.bf16.msrb.mxu3 %v2124_v13  ;;  %v2064_v42 = vor.u32 %v2282_v41, %v2063_v39  ;;  %v271_v44 = vunpack.c.l.b16 %v242_v43  ;;  %v2301_v47 = vld [vmem:[%s3272_s3 + $0x28] sm:$0xf0]  ;;  %v2155_v48 = vld [vmem:[%s3272_s3 + $0x8] sm:$0xf]  ;;  %v2298_v50 = vld [vmem:[%s3272_s3 + $0x10] sm:$0xf0] }
   0xd   :  { %2089 = vmatmul.msk.bf16.vlgmr.msra.gmra.mxu1 %vm112_vm0, %v2277_v23  ;;  %131 = vmatpush.bf16.msra.mxu0 %v2076_v40  ;;  %v2663_v49 = vor.u32 %v2301_v47, %v2167_v46  ;;  %v2669_v51 = vor.u32 %v2298_v50, %v2155_v48  ;;  %v2704_v61 = vld [vmem:[%s3274_s7 + $0x2] ss:$8 sm:$0x7]  ;;  %v30_v4 = vld [vmem:[%s3274_s7] ss:$8 sm:$0x7] }
   0xe   :  { %v2649_v45 = vpack.c.b16 %v271_v44, %v271_v44  ;;  %v2707_v62 = vperm.slane %v2704_v61, 0  ;;  %v2721_v5 = vperm.slane %v30_v4, 2  ;;  %v2042_v21 = vld [vmem:[%s3274_s7 + $0x1] ss:$8 sm:$0x7]  ;;  %v2749_v25 = vperm.slane %v30_v4, 1 }
   0xf   :  { %v2747_v22 = vperm.slane %v2042_v21, 1  ;;  %v2755_v34 = vperm.slane %v30_v4, 0  ;;  %v2757_v38 = vperm.slane %v2042_v21, 0 }
  0x10   :  { %190 = vmatpush.bf16.msrb.mxu2 %v2072_v18  ;;  %327 = vmatpush.bf16.msrb.mxu3 %v2112_v19 }
  0x11   :  { %132 = vmatpush.bf16.msra.mxu0 %v2064_v42 }
  0x14   :  { %487 = vmatpush.bf16.msra.mxu2 %v2575_v24  ;;  %500 = vmatpush.bf16.msra.mxu3 %v2580_v26 }
  0x15   :  { %2085 = vmatmul.msk.bf16.vlgmr.msra.gmra.mxu0 %vm112_vm0, %v2277_v23 }
  0x18   :  { %488 = vmatpush.bf16.msra.mxu2 %v2613_v33  ;;  %501 = vmatpush.bf16.msra.mxu3 %v2618_v35 }
  0x1b   :  { %2091 = vmatmul.msk.bf16.gmra.mxu2 %vm112_vm0, %v2279_v27  ;;  %2133 = vmatmul.msk.bf16.vlgmr.msrb.gmra.mxu3 %vm112_vm0, %v2591_v28 }
  0x1c   :  { %582 = vmatpush.bf16.msrb.mxu3 %v2575_v24 }
  0x20   :  { %583 = vmatpush.bf16.msrb.mxu3 %v2613_v33 }
  0x25   :  { %2086 = vmatmul.msk.bf16.gmra.mxu0 %vm112_vm0, %v2552_v16 }
  0x2b   :  { %2093 = vmatmul.msk.bf16.vlgmr.msrb.gmra.mxu2 %vm112_vm0, %v2277_v23  ;;  %2134 = vmatmul.msk.bf16.gmra.mxu3 %vm112_vm0, %v2599_v29 }
  0x2c   :  { %513 = vmatpush.bf16.msrb.mxu2 %v2663_v49 }
  0x30   :  { %514 = vmatpush.bf16.msrb.mxu2 %v2669_v51 }
  0x35   :  { %2087 = vmatmul.msk.bf16.gmra.mxu0 %vm112_vm0, %v2279_v27 }
  0x3b   :  { %2094 = vmatmul.msk.bf16.gmra.mxu2 %vm112_vm0, %v2552_v16  ;;  %2135 = vmatmul.msk.bf16.gmra.mxu3 %vm112_vm0, %v2627_v36 }
  0x45   :  { %2088 = vmatmul.msk.bf16.gmra.mxu0 %vm112_vm0, %v2557_v17 }
  0x4b   :  { %2095 = vmatmul.msk.bf16.gmra.mxu2 %vm112_vm0, %v2279_v27  ;;  %2136 = vmatmul.msk.bf16.gmra.mxu3 %vm112_vm0, %v2649_v45 }
  0x5b   :  { %2096 = vmatmul.msk.bf16.gmra.mxu2 %vm112_vm0, %v2557_v17  ;;  %502 = vmatmul.bf16.vlgmr.msra.gmra.mxu3 %v2466_v52 }
  0x5c   :  { %608 = vmatpush.bf16.msra.mxu3 %v2663_v49 }
  0x60   :  { %609 = vmatpush.bf16.msra.mxu3 %v2669_v51 }
  0x6b   :  { %489 = vmatmul.bf16.vlgmr.msra.gmra.mxu2 %v2466_v52 }
  0x6c   :  { %595 = vmatpush.bf16.msra.mxu2 %v2580_v26 }
  0x70   :  { %596 = vmatpush.bf16.msra.mxu2 %v2618_v35 }
  0x7b   :  { %515 = vmatmul.bf16.vlgmr.msrb.gmra.mxu2 %v2466_v52 }
  0x7c   :  { %677 = vmatpush.bf16.msrb.mxu2 %v2575_v24 }
  0x80   :  { %678 = vmatpush.bf16.msrb.mxu2 %v2613_v33 }
  0x8a   :  { %v163_v23 = vpop.f32.mrf.mxu1 }
  0x8b   :  { %v164_v30 = vadd.f32 %v163_v23, %v2749_v25 }
  0x8e   :  { %v2685_v53 = vpop.f32.mrf.mxu2  ;;  %v2687_v54 = vpop.f32.mrf.mxu3 }
  0x92   :  { %v134_v39 = vpop.f32.mrf.mxu0 }
  0x93   :  { %v135_v40 = vadd.f32 %v134_v39, %v2755_v34 }
  0x96   :  { %v2689_v55 = vpop.f32.mrf.mxu2  ;;  %v2691_v56 = vpop.f32.mrf.mxu3 }
  0x9e   :  { %v2693_v57 = vpop.f32.mrf.mxu2  ;;  %v2695_v58 = vpop.f32.mrf.mxu3 }
  0xa6   :  { %v2697_v59 = vpop.f32.mrf.mxu2  ;;  %v2699_v60 = vpop.f32.mrf.mxu3 }
  0xae   :  { %v2709_v63 = vpop.f32.mrf.mxu2  ;;  %v334_v0 = vpop.f32.mrf.mxu3 }
  0xaf   :  { %v2712_v1 = vadd.f32 %v334_v0, %v2707_v62 }
  0xb6   :  { %v2714_v2 = vpop.f32.mrf.mxu2  ;;  %v2716_v3 = vpop.f32.mrf.mxu3 }
  0xbe   :  { %v197_v6 = vpop.f32.mrf.mxu2  ;;  %v339_v7 = vpop.f32.mrf.mxu3 }
  0xbf   :  { %v2724_v8 = vadd.f32 %v197_v6, %v2721_v5  ;;  %v2727_v9 = vadd.f32 %v339_v7, %v2707_v62 }
  0xc6   :  { %v2729_v10 = vpop.f32.mrf.mxu2  ;;  %v2731_v11 = vpop.f32.mrf.mxu3 }
  0xc7   :  { %3278 = vst [vmem:[#allocation5_spill] sm:$0xff] %v2731_v11 }
  0xce   :  { %v202_v12 = vpop.f32.mrf.mxu2  ;;  %v344_v13 = vpop.f32.mrf.mxu3 }
  0xcf   :  { %v2734_v14 = vadd.f32 %v202_v12, %v2721_v5  ;;  %v2737_v15 = vadd.f32 %v344_v13, %v2707_v62 }
  0xd1   :  { %3279 = vst [vmem:[#allocation6_spill] sm:$0xff] %v2737_v15 }
  0xd6   :  { %v2739_v16 = vpop.f32.mrf.mxu2  ;;  %v346_v17 = vpop.f32.mrf.mxu3 }
  0xd7   :  { %v2761_v17 = vperm.slane %v2042_v21, 2  ;;  %v193_v21 = vadd.f32 %v2709_v63, %v2721_v5 }
  0xde   :  { %v207_v18 = vpop.f32.mrf.mxu2  ;;  %v503_v19 = vpop.f32.mrf.mxu3 }
  0xdf   :  { %v2742_v20 = vadd.f32 %v207_v18, %v2721_v5  ;;  %v504_v31 = vadd.f32 %v503_v19, %v2747_v22 }
  0xe1   :  { %v540_v37 = vadd.f32 %v504_v31, %v164_v30 }
  0xe3   :  { %v2170_v42 = vmul.f32 -1.442695, %v540_v37 }
  0xe5   :  { %2316 = vpow2.f32 %v2170_v42 }
  0xe6   :  { %v2751_v27 = vpop.f32.mrf.mxu2  ;;  %v505_v32 = vpop.f32.mrf.mxu3 }
  0xeb   :  { %v2317_v48 = vpop.eup %2316 }
  0xec   :  { %v544_v52 = vadd.f32 1.0, %v2317_v48  ;;  %v2125_v48 = vld [vmem:[%s3270_s4 + $0x24] sm:$0xf0] }
  0xee   :  { %v490_v41 = vpop.f32.mrf.mxu2  ;;  %vm550_vm5 = vweird.f32 %v544_v52 }
  0xef   :  { %v491_v43 = vadd.f32 %v490_v41, %v2757_v38 }
  0xf1   :  { %v520_v44 = vadd.f32 %v491_v43, %v135_v40 }
  0xf3   :  { %v2169_v46 = vmul.f32 -1.442695, %v520_v44 }
  0xf5   :  { %2318 = vpow2.f32 %v2169_v46 }
  0xf6   :  { %v492_v47 = vpop.f32.mrf.mxu2 }
  0xf7   :  { %v2293_v47 = vld [vmem:[%s3270_s4 + $0x1c] sm:$0xf] }
  0xf8   :  { %v2128_v63 = vor.u32 %v2293_v47, %v2125_v48 }
  0xfa   :  { %354 = vmatpush.bf16.msrb.mxu0 %v2128_v63 }
  0xfb   :  { %v2319_v50 = vpop.eup %2318 }
  0xfc   :  { %v524_v0 = vadd.f32 1.0, %v2319_v50  ;;  %v2290_v50 = vld [vmem:[%s3270_s4 + $0x4] sm:$0xf] }
  0xfe   :  { %2320 = vrcp.f32 %v524_v0  ;;  %v516_v4 = vpop.f32.mrf.mxu2  ;;  %v536_v23 = vand.u32 2147483648, %v524_v0  ;;  %v534_v31 = vand.u32 2147483647, %v524_v0  ;;  %vm530_vm2 = vweird.f32 %v524_v0 }
  0xff   :  { %2322 = vrcp.f32 %v544_v52  ;;  %v517_v32 = vadd.f32 %v516_v4, %v2761_v17  ;;  %v2113_v4 = vld [vmem:[%s3270_s4 + $0xc] sm:$0xf0] }
 0x100   :  { %v537_v40 = vor.u32 1.1754944e-38, %v536_v23  ;;  %vm535_vm4 = vcmp.eq.f32.partialorder %v534_v31, 8.507059e+37 }
 0x104   :  { %v2321_v6 = vpop.eup %2320 }
 0x105   :  { %v2323_v7 = vpop.eup %2322  ;;  %v526_v12 = vmul.f32 %v2321_v6, %v524_v0  ;;  %vm531_vm1 = vweird.f32 %v2321_v6  ;;  %v556_v0 = vand.u32 2147483648, %v544_v52 }
 0x106   :  { %v518_v13 = vpop.f32.mrf.mxu2  ;;  %v546_v19 = vmul.f32 %v2323_v7, %v544_v52  ;;  %vm532_vm3 = vmor %vm530_vm2, %vm531_vm1  ;;  %vm551_vm6 = vweird.f32 %v2323_v7 }
 0x107   :  { %v527_v18 = vsub.f32 1.0, %v526_v12  ;;  %v554_v12 = vand.u32 2147483647, %v544_v52  ;;  %vm552_vm7 = vmor %vm550_vm5, %vm551_vm6  ;;  %v2116_v13 = vor.u32 %v2290_v50, %v2113_v4 }
 0x108   :  { %v547_v39 = vsub.f32 1.0, %v546_v19 }
 0x109   :  { %v528_v30 = vmul.f32 %v2321_v6, %v527_v18  ;;  %v557_v18 = vor.u32 1.1754944e-38, %v556_v0  ;;  %vm555_vm8 = vcmp.eq.f32.partialorder %v554_v12, 8.507059e+37  ;;  %355 = vmatpush.bf16.msrb.mxu0 %v2116_v13 }
 0x10a   :  { %v548_v44 = vmul.f32 %v2323_v7, %v547_v39  ;;  %v165_v39 = vpop.f32.mrf.mxu1 }
 0x10b   :  { %v529_v37 = vadd.f32 %v2321_v6, %v528_v30 }
 0x10c   :  { %2137 = vmatmul.msk.bf16.vlgmr.msrb.gmra.mxu0 %vm112_vm0, %v2591_v28 }
 0x10d   :  { %v533_v41 = vsel %vm532_vm3, %v2321_v6, %v529_v37  ;;  %v549_v6 = vadd.f32 %v2323_v7, %v548_v44  ;;  %703 = vmatpush.bf16.msra.mxu0 %v2663_v49 }
 0x10e   :  { %v538_v42 = vsel %vm535_vm4, %v537_v40, %v533_v41 }
 0x10f   :  { %v560_v43 = vmul.f32 %v538_v42, %v517_v32  ;;  %v553_v19 = vsel %vm552_vm7, %v2323_v7, %v549_v6  ;;  %v136_v7 = vpop.f32.mrf.mxu0 }
 0x110   :  { %v558_v31 = vsel %vm555_vm8, %v557_v18, %v553_v19  ;;  %v137_v42 = vadd.f32 %v136_v7, %v2755_v34 }
 0x111   :  { %v561_v46 = vadd.f32 %v560_v43, %v193_v21  ;;  %704 = vmatpush.bf16.msra.mxu0 %v2669_v51  ;;  %v166_v21 = vadd.f32 %v165_v39, %v2749_v25 }
 0x113   :  { %2324 = vtanh.f32 %v561_v46 }
 0x115   :  { %867 = vmatpush.bf16.msrb.mxu0 %v2575_v24 }
 0x117   :  { %v2807_v19 = vpop.f32.mrf.mxu0 }
 0x119   :  { %v2325_v23 = vpop.eup %2324  ;;  %868 = vmatpush.bf16.msrb.mxu0 %v2613_v33 }
 0x11a   :  { %v563_v30 = vsub.f32 0.0, %v2325_v23 }
 0x11c   :  { %v564_v32 = vmul.f32 %v563_v30, %v558_v31  ;;  %2138 = vmatmul.msk.bf16.gmra.mxu0 %vm112_vm0, %v2599_v29 }
 0x11e   :  { %v2781_v37 = vadd.f32 %v2325_v23, %v564_v32 }
 0x120   :  { %v572_v52 = vpack.c.bf16 %v2781_v37, %v2781_v37 }
 0x122   :  { %2171 = vmatmul.msk.bf16.vlgmr.msrb.gmra.mxu3 %vm112_vm0, %v572_v52  ;;  %2172 = vmatmul.msk.bf16.vlgmr.msra.gmra.mxu2 %vm112_vm0, %v572_v52 }
 0x123   :  { %690 = vmatpush.bf16.msrb.mxu3 %v2580_v26  ;;  %785 = vmatpush.bf16.msra.mxu2 %v2580_v26 }
 0x127   :  { %691 = vmatpush.bf16.msrb.mxu3 %v2618_v35  ;;  %786 = vmatpush.bf16.msra.mxu2 %v2618_v35 }
 0x12c   :  { %2139 = vmatmul.msk.bf16.gmra.mxu0 %vm112_vm0, %v2627_v36 }
 0x132   :  { %2173 = vmatmul.msk.bf16.vlgmr.msra.gmra.mxu3 %vm112_vm0, %v572_v52 }
 0x133   :  { %798 = vmatpush.bf16.msra.mxu3 %v2663_v49 }
 0x137   :  { %799 = vmatpush.bf16.msra.mxu3 %v2669_v51 }
 0x13c   :  { %2140 = vmatmul.msk.bf16.gmra.mxu0 %vm112_vm0, %v2649_v45 }
 0x1a5   :  { %v585_v40 = vpop.f32.mrf.mxu3  ;;  %v598_v41 = vpop.f32.mrf.mxu2 }
 0x1a6   :  { %v586_v43 = vadd.f32 %v585_v40, %v2757_v38  ;;  %v599_v44 = vadd.f32 %v598_v41, %v2747_v22 }
 0x1a8   :  { %v615_v46 = vadd.f32 %v586_v43, %v137_v42  ;;  %v635_v47 = vadd.f32 %v599_v44, %v166_v21  ;;  %v2809_v21 = vpop.f32.mrf.mxu0 }
 0x1aa   :  { %v2174_v48 = vmul.f32 -1.442695, %v615_v46  ;;  %v2175_v50 = vmul.f32 -1.442695, %v635_v47 }
 0x1ac   :  { %2326 = vpow2.f32 %v2174_v48 }
 0x1ad   :  { %2328 = vpow2.f32 %v2175_v50  ;;  %v587_v0 = vpop.f32.mrf.mxu3  ;;  %v600_v63 = vpop.f32.mrf.mxu2  ;;  %v195_v50 = vadd.f32 %v2714_v2, %v2721_v5 }
 0x1b2   :  { %v2327_v4 = vpop.eup %2326 }
 0x1b3   :  { %v2329_v6 = vpop.eup %2328  ;;  %v619_v12 = vadd.f32 1.0, %v2327_v4 }
 0x1b4   :  { %v639_v13 = vadd.f32 1.0, %v2329_v6  ;;  %v2814_v6 = vpop.f32.mrf.mxu0 }
 0x1b5   :  { %2330 = vrcp.f32 %v619_v12  ;;  %v611_v18 = vpop.f32.mrf.mxu3  ;;  %v631_v39 = vand.u32 2147483648, %v619_v12  ;;  %v629_v41 = vand.u32 2147483647, %v619_v12  ;;  %vm625_vm10 = vweird.f32 %v619_v12 }
 0x1b6   :  { %2332 = vrcp.f32 %v639_v13  ;;  %v612_v46 = vadd.f32 %v611_v18, %v2761_v17  ;;  %vm645_vm14 = vweird.f32 %v639_v13 }
 0x1b7   :  { %v632_v44 = vor.u32 1.1754944e-38, %v631_v39  ;;  %vm630_vm12 = vcmp.eq.f32.partialorder %v629_v41, 8.507059e+37 }
 0x1bb   :  { %v2331_v23 = vpop.eup %2330 }
 0x1bc   :  { %v2333_v30 = vpop.eup %2332  ;;  %v621_v31 = vmul.f32 %v2331_v23, %v619_v12  ;;  %vm626_vm9 = vweird.f32 %v2331_v23  ;;  %v2817_v2 = vpop.f32.mrf.mxu0 }
 0x1bd   :  { %v613_v32 = vpop.f32.mrf.mxu3  ;;  %v641_v7 = vmul.f32 %v2333_v30, %v639_v13  ;;  %vm627_vm11 = vmor %vm625_vm10, %vm626_vm9  ;;  %vm646_vm13 = vweird.f32 %v2333_v30 }
 0x1be   :  { %v622_v52 = vsub.f32 1.0, %v621_v31  ;;  %v651_v31 = vand.u32 2147483648, %v639_v13  ;;  %v649_v32 = vand.u32 2147483647, %v639_v13  ;;  %vm647_vm15 = vmor %vm645_vm14, %vm646_vm13 }
 0x1bf   :  { %v642_v43 = vsub.f32 1.0, %v641_v7 }
 0x1c0   :  { %v623_v40 = vmul.f32 %v2331_v23, %v622_v52  ;;  %vm650_vm1 = vcmp.eq.f32.partialorder %v649_v32, 8.507059e+37 }
 0x1c1   :  { %v643_v63 = vmul.f32 %v2333_v30, %v642_v43 }
 0x1c2   :  { %v624_v42 = vadd.f32 %v2331_v23, %v623_v40 }
 0x1c3   :  { %v644_v12 = vadd.f32 %v2333_v30, %v643_v63  ;;  %v2853_v63 = vperm.slane %v2704_v61, 1 }
 0x1c4   :  { %v628_v47 = vsel %vm627_vm11, %v2331_v23, %v624_v42  ;;  %v652_v23 = vor.u32 1.1754944e-38, %v651_v31  ;;  %v2826_v13 = vpop.f32.mrf.mxu0 }
 0x1c5   :  { %v633_v48 = vsel %vm630_vm12, %v632_v44, %v628_v47  ;;  %v648_v52 = vsel %vm647_vm15, %v2333_v30, %v644_v12  ;;  %v2131_v44 = vld [vmem:[%s3270_s4 + $0x20] sm:$0xf]  ;;  %v2119_v47 = vld [vmem:[%s3270_s4 + $0x8] sm:$0xf] }
 0x1c6   :  { %v655_v0 = vmul.f32 %v633_v48, %v612_v46  ;;  %v653_v39 = vsel %vm650_vm1, %v652_v23, %v648_v52  ;;  %v2295_v46 = vld [vmem:[%s3270_s4 + $0x28] sm:$0xf0] }
 0x1c7   :  { %v2132_v48 = vor.u32 %v2295_v46, %v2131_v44  ;;  %v140_v46 = vadd.f32 %v2807_v19, %v2755_v34 }
 0x1c8   :  { %v656_v4 = vadd.f32 %v655_v0, %v195_v50  ;;  %v2292_v50 = vld [vmem:[%s3270_s4 + $0x10] sm:$0xf0] }
 0x1c9   :  { %382 = vmatpush.bf16.msrb.mxu1 %v2132_v48  ;;  %v2120_v0 = vor.u32 %v2292_v50, %v2119_v47 }
 0x1ca   :  { %2334 = vtanh.f32 %v656_v4 }
 0x1cd   :  { %383 = vmatpush.bf16.msrb.mxu1 %v2120_v0 }
 0x1d0   :  { %v2335_v18 = vpop.eup %2334  ;;  %2141 = vmatmul.msk.bf16.vlgmr.msrb.gmra.mxu1 %vm112_vm0, %v2591_v28 }
 0x1d1   :  { %v658_v7 = vsub.f32 %v2781_v37, %v2335_v18  ;;  %v2834_v37 = vpop.f32.mrf.mxu0  ;;  %772 = vmatpush.bf16.msra.mxu1 %v2575_v24 }
 0x1d3   :  { %v659_v40 = vmul.f32 %v658_v7, %v653_v39 }
 0x1d5   :  { %v2819_v41 = vadd.f32 %v2335_v18, %v659_v40  ;;  %773 = vmatpush.bf16.msra.mxu1 %v2613_v33 }
 0x1d7   :  { %v667_v42 = vpack.c.bf16 %v2819_v41, %v2819_v41 }
 0x1d9   :  { %2176 = vmatmul.msk.bf16.vlgmr.msrb.gmra.mxu2 %vm112_vm0, %v667_v42  ;;  %2177 = vmatmul.msk.bf16.vlgmr.msrb.gmra.mxu3 %vm112_vm0, %v667_v42  ;;  %v2836_v30 = vpop.f32.mrf.mxu0 }
 0x1da   :  { %2178 = vmatmul.msk.bf16.vlgmr.msra.gmra.mxu0 %vm112_vm0, %v667_v42  ;;  %893 = vmatpush.bf16.msrb.mxu2 %v2663_v49 }
 0x1db   :  { %962 = vmatpush.bf16.msrb.mxu3 %v2575_v24  ;;  %975 = vmatpush.bf16.msra.mxu0 %v2580_v26 }
 0x1dc   :  { %880 = vmatpush.bf16.msrb.mxu1 %v2580_v26 }
 0x1de   :  { %894 = vmatpush.bf16.msrb.mxu2 %v2669_v51 }
 0x1df   :  { %963 = vmatpush.bf16.msrb.mxu3 %v2613_v33  ;;  %976 = vmatpush.bf16.msra.mxu0 %v2618_v35 }
 0x1e0   :  { %881 = vmatpush.bf16.msrb.mxu1 %v2618_v35 }
 0x1e1   :  { %v2838_v43 = vpop.f32.mrf.mxu0  ;;  %2142 = vmatmul.msk.bf16.gmra.mxu1 %vm112_vm0, %v2599_v29  ;;  %v169_v29 = vadd.f32 %v2685_v53, %v2749_v25 }
 0x1e9   :  { %v362_v4 = vpop.f32.mrf.mxu0 }
 0x1ea   :  { %v2856_v12 = vadd.f32 %v362_v4, %v2853_v63 }
 0x1f1   :  { %v2863_v31 = vpop.f32.mrf.mxu0  ;;  %2143 = vmatmul.msk.bf16.gmra.mxu1 %vm112_vm0, %v2627_v36 }
 0x1f9   :  { %v367_v32 = vpop.f32.mrf.mxu0 }
 0x1fa   :  { %v2867_v52 = vadd.f32 %v367_v32, %v2853_v63 }
 0x201   :  { %v369_v18 = vpop.f32.mrf.mxu0  ;;  %2144 = vmatmul.msk.bf16.gmra.mxu1 %vm112_vm0, %v2649_v45 }
 0x202   :  { %v2872_v23 = vadd.f32 %v369_v18, %v2853_v63 }
 0x204   :  { %3280 = vst [vmem:[#allocation7_spill] sm:$0xff] %v2872_v23 }
 0x209   :  { %v372_v28 = vpop.f32.mrf.mxu0 }
 0x20a   :  { %v2875_v7 = vadd.f32 %v372_v28, %v2853_v63 }
 0x20c   :  { %3281 = vst [vmem:[#allocation8_spill] sm:$0xff] %v2875_v7 }
 0x211   :  { %v374_v39 = vpop.f32.mrf.mxu0 }
 0x257   :  { %v706_v40 = vpop.f32.mrf.mxu0 }
 0x25c   :  { %v680_v42 = vpop.f32.mrf.mxu2  ;;  %v693_v44 = vpop.f32.mrf.mxu3 }
 0x25d   :  { %v681_v47 = vadd.f32 %v680_v42, %v2757_v38  ;;  %v694_v48 = vadd.f32 %v693_v44, %v2747_v22 }
 0x25f   :  { %v710_v50 = vadd.f32 %v681_v47, %v140_v46  ;;  %v730_v0 = vadd.f32 %v694_v48, %v169_v29  ;;  %v708_v36 = vpop.f32.mrf.mxu0 }
 0x260   :  { %v2887_v36 = vpop.f32.mrf.mxu1 }
 0x261   :  { %v2179_v4 = vmul.f32 -1.442695, %v710_v50  ;;  %v2180_v32 = vmul.f32 -1.442695, %v730_v0 }
 0x263   :  { %2336 = vpow2.f32 %v2179_v4  ;;  %v707_v4 = vadd.f32 %v706_v40, %v2761_v17 }
 0x264   :  { %2338 = vpow2.f32 %v2180_v32  ;;  %v682_v45 = vpop.f32.mrf.mxu2  ;;  %v695_v18 = vpop.f32.mrf.mxu3 }
 0x269   :  { %v2337_v28 = vpop.eup %2336 }
 0x26a   :  { %v2339_v39 = vpop.eup %2338  ;;  %v714_v7 = vadd.f32 1.0, %v2337_v28 }
 0x26b   :  { %v734_v53 = vadd.f32 1.0, %v2339_v39 }
 0x26c   :  { %2340 = vrcp.f32 %v714_v7  ;;  %v726_v44 = vand.u32 2147483648, %v714_v7  ;;  %v724_v47 = vand.u32 2147483647, %v714_v7  ;;  %vm720_vm3 = vweird.f32 %v714_v7 }
 0x26d   :  { %2342 = vrcp.f32 %v734_v53  ;;  %vm740_vm7 = vweird.f32 %v734_v53 }
 0x26e   :  { %v727_v50 = vor.u32 1.1754944e-38, %v726_v44  ;;  %vm725_vm5 = vcmp.eq.f32.partialorder %v724_v47, 8.507059e+37  ;;  %v744_v44 = vand.u32 2147483647, %v734_v53  ;;  %v2895_v47 = vperm.slane %v2704_v61, 2 }
 0x270   :  { %vm745_vm9 = vcmp.eq.f32.partialorder %v744_v44, 8.507059e+37 }
 0x272   :  { %v2341_v19 = vpop.eup %2340 }
 0x273   :  { %v2343_v15 = vpop.eup %2342  ;;  %v716_v42 = vmul.f32 %v2341_v19, %v714_v7  ;;  %vm721_vm2 = vweird.f32 %v2341_v19  ;;  %v746_v7 = vand.u32 2147483648, %v734_v53 }
 0x274   :  { %v736_v46 = vmul.f32 %v2343_v15, %v734_v53  ;;  %vm722_vm4 = vmor %vm720_vm3, %vm721_vm2  ;;  %vm741_vm6 = vweird.f32 %v2343_v15 }
 0x275   :  { %v717_v11 = vsub.f32 1.0, %v716_v42  ;;  %v2891_v42 = vpop.f32.mrf.mxu1  ;;  %vm742_vm8 = vmor %vm740_vm7, %vm741_vm6  ;;  %v747_v23 = vor.u32 1.1754944e-38, %v746_v7 }
 0x276   :  { %v737_v0 = vsub.f32 1.0, %v736_v46 }
 0x277   :  { %v718_v29 = vmul.f32 %v2341_v19, %v717_v11 }
 0x278   :  { %v738_v28 = vmul.f32 %v2343_v15, %v737_v0 }
 0x279   :  { %v719_v48 = vadd.f32 %v2341_v19, %v718_v29 }
 0x27a   :  { %v739_v11 = vadd.f32 %v2343_v15, %v738_v28  ;;  %v142_v28 = vadd.f32 %v2809_v21, %v2755_v34 }
 0x27b   :  { %v723_v32 = vsel %vm722_vm4, %v2341_v19, %v719_v48 }
 0x27c   :  { %v728_v45 = vsel %vm725_vm5, %v727_v50, %v723_v32  ;;  %v743_v46 = vsel %vm742_vm8, %v2343_v15, %v739_v11 }
 0x27d   :  { %v750_v18 = vmul.f32 %v728_v45, %v707_v4  ;;  %v748_v19 = vsel %vm745_vm9, %v747_v23, %v743_v46  ;;  %v390_v48 = vpop.f32.mrf.mxu1  ;;  %v171_v46 = vadd.f32 %v2689_v55, %v2749_v25 }
 0x27e   :  { %v2898_v50 = vadd.f32 %v390_v48, %v2895_v47 }
 0x27f   :  { %v751_v39 = vadd.f32 %v750_v18, %v2724_v8 }
 0x281   :  { %2344 = vtanh.f32 %v751_v39 }
 0x285   :  { %v2908_v61 = vpop.f32.mrf.mxu1 }
 0x287   :  { %v2345_v29 = vpop.eup %2344 }
 0x288   :  { %v753_v40 = vsub.f32 %v2819_v41, %v2345_v29 }
 0x28a   :  { %v754_v8 = vmul.f32 %v753_v40, %v748_v19 }
 0x28c   :  { %v2900_v0 = vadd.f32 %v2345_v29, %v754_v8 }
 0x28d   :  { %v395_v15 = vpop.f32.mrf.mxu1 }
 0x28e   :  { %v762_v53 = vpack.c.bf16 %v2900_v0, %v2900_v0  ;;  %v2916_v41 = vadd.f32 %v395_v15, %v2895_v47 }
 0x290   :  { %2181 = vmatmul.msk.bf16.vlgmr.msra.gmra.mxu1 %vm112_vm0, %v762_v53  ;;  %2182 = vmatmul.msk.bf16.vlgmr.msra.gmra.mxu2 %vm112_vm0, %v762_v53  ;;  %3282 = vst [vmem:[#allocation9_spill] sm:$0xff] %v2916_v41 }
 0x291   :  { %2183 = vmatmul.msk.bf16.vlgmr.msra.gmra.mxu3 %vm112_vm0, %v762_v53  ;;  %988 = vmatpush.bf16.msra.mxu1 %v2663_v49 }
 0x292   :  { %1057 = vmatpush.bf16.msra.mxu2 %v2575_v24  ;;  %1070 = vmatpush.bf16.msra.mxu3 %v2580_v26 }
 0x295   :  { %989 = vmatpush.bf16.msra.mxu1 %v2669_v51  ;;  %v2918_v23 = vpop.f32.mrf.mxu1 }
 0x296   :  { %1058 = vmatpush.bf16.msra.mxu2 %v2613_v33  ;;  %1071 = vmatpush.bf16.msra.mxu3 %v2618_v35  ;;  %3283 = vst [vmem:[#allocation10_spill] sm:$0xff] %v2918_v23 }
 0x29d   :  { %v400_v4 = vpop.f32.mrf.mxu1 }
 0x29e   :  { %v2921_v32 = vadd.f32 %v400_v4, %v2895_v47 }
 0x2a0   :  { %3284 = vst [vmem:[#allocation11_spill] sm:$0xff] %v2921_v32 }
 0x2a5   :  { %v402_v45 = vpop.f32.mrf.mxu1 }
 0x30d   :  { %v775_v18 = vpop.f32.mrf.mxu1 }
 0x30e   :  { %v776_v39 = vadd.f32 %v775_v18, %v2757_v38 }
 0x310   :  { %v805_v11 = vadd.f32 %v776_v39, %v142_v28 }
 0x312   :  { %v2184_v7 = vmul.f32 -1.442695, %v805_v11 }
 0x313   :  { %v788_v44 = vpop.f32.mrf.mxu2 }
 0x314   :  { %2346 = vpow2.f32 %v2184_v7  ;;  %v789_v29 = vadd.f32 %v788_v44, %v2747_v22  ;;  %v801_v40 = vpop.f32.mrf.mxu3 }
 0x315   :  { %v777_v19 = vpop.f32.mrf.mxu1 }
 0x316   :  { %v825_v8 = vadd.f32 %v789_v29, %v171_v46 }
 0x318   :  { %v2185_v48 = vmul.f32 -1.442695, %v825_v8 }
 0x31a   :  { %v2347_v53 = vpop.eup %2346  ;;  %2348 = vpow2.f32 %v2185_v48  ;;  %v802_v48 = vadd.f32 %v801_v40, %v2761_v17 }
 0x31b   :  { %v809_v15 = vadd.f32 1.0, %v2347_v53  ;;  %v790_v4 = vpop.f32.mrf.mxu2 }
 0x31c   :  { %v803_v21 = vpop.f32.mrf.mxu3 }
 0x31d   :  { %2350 = vrcp.f32 %v809_v15  ;;  %v821_v55 = vand.u32 2147483648, %v809_v15  ;;  %v819_v44 = vand.u32 2147483647, %v809_v15  ;;  %vm815_vm11 = vweird.f32 %v809_v15 }
 0x31e   :  { %v200_v21 = vadd.f32 %v2729_v10, %v2721_v5 }
 0x31f   :  { %v822_v29 = vor.u32 1.1754944e-38, %v821_v55  ;;  %vm820_vm13 = vcmp.eq.f32.partialorder %v819_v44, 8.507059e+37 }
 0x320   :  { %v2349_v45 = vpop.eup %2348 }
 0x321   :  { %v829_v18 = vadd.f32 1.0, %v2349_v45 }
 0x323   :  { %v2351_v28 = vpop.eup %2350  ;;  %2352 = vrcp.f32 %v829_v18  ;;  %v841_v41 = vand.u32 2147483648, %v829_v18  ;;  %vm835_vm15 = vweird.f32 %v829_v18 }
 0x324   :  { %v811_v39 = vmul.f32 %v2351_v28, %v809_v15  ;;  %vm816_vm10 = vweird.f32 %v2351_v28  ;;  %v839_v15 = vand.u32 2147483647, %v829_v18 }
 0x325   :  { %vm817_vm12 = vmor %vm815_vm11, %vm816_vm10 }
 0x326   :  { %v812_v11 = vsub.f32 1.0, %v811_v39  ;;  %vm840_vm2 = vcmp.eq.f32.partialorder %v839_v15, 8.507059e+37 }
 0x328   :  { %v813_v7 = vmul.f32 %v2351_v28, %v812_v11 }
 0x329   :  { %v2353_v32 = vpop.eup %2352 }
 0x32a   :  { %v831_v19 = vmul.f32 %v2353_v32, %v829_v18  ;;  %v814_v46 = vadd.f32 %v2351_v28, %v813_v7  ;;  %vm836_vm14 = vweird.f32 %v2353_v32 }
 0x32b   :  { %vm837_vm1 = vmor %vm835_vm15, %vm836_vm14 }
 0x32c   :  { %v832_v8 = vsub.f32 1.0, %v831_v19  ;;  %v818_v53 = vsel %vm817_vm12, %v2351_v28, %v814_v46  ;;  %v842_v19 = vor.u32 1.1754944e-38, %v841_v41 }
 0x32d   :  { %v823_v4 = vsel %vm820_vm13, %v822_v29, %v818_v53 }
 0x32e   :  { %v845_v45 = vmul.f32 %v823_v4, %v802_v48  ;;  %v833_v39 = vmul.f32 %v2353_v32, %v832_v8 }
 0x330   :  { %v846_v11 = vadd.f32 %v845_v45, %v200_v21  ;;  %v834_v23 = vadd.f32 %v2353_v32, %v833_v39 }
 0x332   :  { %2354 = vtanh.f32 %v846_v11  ;;  %v838_v55 = vsel %vm837_vm1, %v2353_v32, %v834_v23  ;;  %v174_v23 = vadd.f32 %v2693_v57, %v2749_v25  ;;  %v145_v32 = vadd.f32 %v2814_v6, %v2755_v34 }
 0x333   :  { %v843_v28 = vsel %vm840_vm2, %v842_v19, %v838_v55 }
 0x338   :  { %v2355_v7 = vpop.eup %2354 }
 0x339   :  { %v848_v40 = vsub.f32 %v2900_v0, %v2355_v7 }
 0x33b   :  { %v849_v44 = vmul.f32 %v848_v40, %v843_v28 }
 0x33d   :  { %v2933_v46 = vadd.f32 %v2355_v7, %v849_v44 }
 0x33f   :  { %v857_v10 = vpack.c.bf16 %v2933_v46, %v2933_v46 }
 0x341   :  { %2186 = vmatmul.msk.bf16.vlgmr.msrb.gmra.mxu0 %vm112_vm0, %v857_v10  ;;  %2187 = vmatmul.msk.bf16.vlgmr.msrb.gmra.mxu1 %vm112_vm0, %v857_v10 }
 0x342   :  { %2188 = vmatmul.msk.bf16.vlgmr.msrb.gmra.mxu2 %vm112_vm0, %v857_v10  ;;  %1083 = vmatpush.bf16.msrb.mxu0 %v2663_v49 }
 0x343   :  { %1152 = vmatpush.bf16.msrb.mxu1 %v2575_v24  ;;  %1165 = vmatpush.bf16.msrb.mxu2 %v2580_v26 }
 0x346   :  { %1084 = vmatpush.bf16.msrb.mxu0 %v2669_v51 }
 0x347   :  { %1153 = vmatpush.bf16.msrb.mxu1 %v2613_v33  ;;  %1166 = vmatpush.bf16.msrb.mxu2 %v2618_v35 }
 0x3be   :  { %v870_v0 = vpop.f32.mrf.mxu0  ;;  %v883_v41 = vpop.f32.mrf.mxu1 }
 0x3bf   :  { %v871_v18 = vadd.f32 %v870_v0, %v2757_v38  ;;  %v884_v24 = vadd.f32 %v883_v41, %v2747_v22 }
 0x3c1   :  { %v900_v29 = vadd.f32 %v871_v18, %v145_v32  ;;  %v920_v26 = vadd.f32 %v884_v24, %v174_v23 }
 0x3c3   :  { %v2189_v8 = vmul.f32 -1.442695, %v900_v29  ;;  %v2190_v48 = vmul.f32 -1.442695, %v920_v26 }
 0x3c5   :  { %2356 = vpow2.f32 %v2189_v8  ;;  %v896_v33 = vpop.f32.mrf.mxu2 }
 0x3c6   :  { %2358 = vpow2.f32 %v2190_v48  ;;  %v872_v35 = vpop.f32.mrf.mxu0  ;;  %v885_v53 = vpop.f32.mrf.mxu1  ;;  %v897_v41 = vadd.f32 %v896_v33, %v2761_v17 }
 0x3cb   :  { %v2357_v4 = vpop.eup %2356 }
 0x3cc   :  { %v2359_v21 = vpop.eup %2358  ;;  %v904_v45 = vadd.f32 1.0, %v2357_v4 }
 0x3cd   :  { %v924_v57 = vadd.f32 1.0, %v2359_v21  ;;  %v898_v39 = vpop.f32.mrf.mxu2 }
 0x3ce   :  { %2360 = vrcp.f32 %v904_v45  ;;  %v916_v19 = vand.u32 2147483648, %v904_v45  ;;  %v914_v28 = vand.u32 2147483647, %v904_v45  ;;  %vm910_vm4 = vweird.f32 %v904_v45 }
 0x3cf   :  { %2362 = vrcp.f32 %v924_v57  ;;  %v936_v8 = vand.u32 2147483648, %v924_v57  ;;  %vm930_vm8 = vweird.f32 %v924_v57  ;;  %v934_v48 = vand.u32 2147483647, %v924_v57 }
 0x3d0   :  { %v917_v0 = vor.u32 1.1754944e-38, %v916_v19  ;;  %vm915_vm6 = vcmp.eq.f32.partialorder %v914_v28, 8.507059e+37  ;;  %v147_v19 = vadd.f32 %v2817_v2, %v2755_v34 }
 0x3d1   :  { %v937_v4 = vor.u32 1.1754944e-38, %v936_v8  ;;  %vm935_vm10 = vcmp.eq.f32.partialorder %v934_v48, 8.507059e+37 }
 0x3d4   :  { %v2361_v6 = vpop.eup %2360 }
 0x3d5   :  { %v2363_v11 = vpop.eup %2362  ;;  %v906_v15 = vmul.f32 %v2361_v6, %v904_v45  ;;  %vm911_vm3 = vweird.f32 %v2361_v6 }
 0x3d6   :  { %v926_v7 = vmul.f32 %v2363_v11, %v924_v57  ;;  %vm912_vm5 = vmor %vm910_vm4, %vm911_vm3  ;;  %vm931_vm7 = vweird.f32 %v2363_v11 }
 0x3d7   :  { %v907_v55 = vsub.f32 1.0, %v906_v15  ;;  %vm932_vm9 = vmor %vm930_vm8, %vm931_vm7 }
 0x3d8   :  { %v927_v10 = vsub.f32 1.0, %v926_v7 }
 0x3d9   :  { %v908_v40 = vmul.f32 %v2361_v6, %v907_v55 }
 0x3da   :  { %v928_v24 = vmul.f32 %v2363_v11, %v927_v10 }
 0x3db   :  { %v909_v44 = vadd.f32 %v2361_v6, %v908_v40 }
 0x3dc   :  { %v929_v26 = vadd.f32 %v2363_v11, %v928_v24 }
 0x3dd   :  { %v913_v23 = vsel %vm912_vm5, %v2361_v6, %v909_v44 }
 0x3de   :  { %v918_v32 = vsel %vm915_vm6, %v917_v0, %v913_v23  ;;  %v933_v35 = vsel %vm932_vm9, %v2363_v11, %v929_v26 }
 0x3df   :  { %v940_v18 = vmul.f32 %v918_v32, %v897_v41  ;;  %v938_v21 = vsel %vm935_vm10, %v937_v4, %v933_v35 }
 0x3e1   :  { %v941_v29 = vadd.f32 %v940_v18, %v2734_v14 }
 0x3e3   :  { %2364 = vtanh.f32 %v941_v29 }
 0x3e9   :  { %v2365_v53 = vpop.eup %2364 }
 0x3ea   :  { %v943_v33 = vsub.f32 %v2933_v46, %v2365_v53  ;;  %v176_v46 = vadd.f32 %v2697_v59, %v2749_v25 }
 0x3ec   :  { %v944_v45 = vmul.f32 %v943_v33, %v938_v21 }
 0x3ee   :  { %v2955_v39 = vadd.f32 %v2365_v53, %v944_v45 }
 0x3f0   :  { %v952_v14 = vpack.c.bf16 %v2955_v39, %v2955_v39 }
 0x3f2   :  { %2191 = vmatmul.msk.bf16.vlgmr.msrb.gmra.mxu3 %vm112_vm0, %v952_v14  ;;  %2192 = vmatmul.msk.bf16.vlgmr.msra.gmra.mxu0 %vm112_vm0, %v952_v14 }
 0x3f3   :  { %2193 = vmatmul.msk.bf16.vlgmr.msra.gmra.mxu1 %vm112_vm0, %v952_v14  ;;  %1178 = vmatpush.bf16.msrb.mxu3 %v2663_v49  ;;  %v205_v14 = vadd.f32 %v2739_v16, %v2721_v5 }
 0x3f7   :  { %1179 = vmatpush.bf16.msrb.mxu3 %v2669_v51 }
 0x46f   :  { %v978_v57 = vpop.f32.mrf.mxu0 }
 0x470   :  { %v979_v6 = vadd.f32 %v978_v57, %v2747_v22  ;;  %v991_v11 = vpop.f32.mrf.mxu1 }
 0x471   :  { %v992_v33 = vadd.f32 %v991_v11, %v2761_v17 }
 0x472   :  { %v1015_v15 = vadd.f32 %v979_v6, %v176_v46 }
 0x474   :  { %v2195_v55 = vmul.f32 -1.442695, %v1015_v15 }
 0x475   :  { %v965_v7 = vpop.f32.mrf.mxu3 }
 0x476   :  { %v966_v40 = vadd.f32 %v965_v7, %v2757_v38  ;;  %2366 = vpow2.f32 %v2195_v55 }
 0x477   :  { %v980_v28 = vpop.f32.mrf.mxu0 }
 0x478   :  { %v995_v44 = vadd.f32 %v966_v40, %v147_v19  ;;  %v993_v49 = vpop.f32.mrf.mxu1 }
 0x47a   :  { %v2194_v51 = vmul.f32 -1.442695, %v995_v44 }
 0x47c   :  { %2368 = vpow2.f32 %v2194_v51  ;;  %v2367_v0 = vpop.eup %2366 }
 0x47d   :  { %v967_v10 = vpop.f32.mrf.mxu3  ;;  %v1019_v41 = vadd.f32 1.0, %v2367_v0 }
 0x47f   :  { %v1031_v55 = vand.u32 2147483648, %v1019_v41  ;;  %vm1025_vm1 = vweird.f32 %v1019_v41  ;;  %v1029_v7 = vand.u32 2147483647, %v1019_v41 }
 0x481   :  { %v1032_v28 = vor.u32 1.1754944e-38, %v1031_v55  ;;  %vm1030_vm3 = vcmp.eq.f32.partialorder %v1029_v7, 8.507059e+37 }
 0x482   :  { %v2369_v59 = vpop.eup %2368 }
 0x483   :  { %v999_v23 = vadd.f32 1.0, %v2369_v59 }
 0x485   :  { %2370 = vrcp.f32 %v999_v23  ;;  %v1011_v26 = vand.u32 2147483648, %v999_v23  ;;  %v1009_v48 = vand.u32 2147483647, %v999_v23  ;;  %vm1005_vm12 = vweird.f32 %v999_v23 }
 0x486   :  { %2372 = vrcp.f32 %v1019_v41 }
 0x487   :  { %v1012_v4 = vor.u32 1.1754944e-38, %v1011_v26  ;;  %vm1010_vm14 = vcmp.eq.f32.partialorder %v1009_v48, 8.507059e+37 }
 0x48b   :  { %v2371_v32 = vpop.eup %2370 }
 0x48c   :  { %v2373_v18 = vpop.eup %2372  ;;  %v1001_v24 = vmul.f32 %v2371_v32, %v999_v23  ;;  %vm1006_vm11 = vweird.f32 %v2371_v32  ;;  %v150_v23 = vadd.f32 %v2826_v13, %v2755_v34 }
 0x48d   :  { %v1021_v2 = vmul.f32 %v2373_v18, %v1019_v41  ;;  %vm1007_vm13 = vmor %vm1005_vm12, %vm1006_vm11  ;;  %vm1026_vm15 = vweird.f32 %v2373_v18  ;;  %v179_v41 = vadd.f32 %v2687_v54, %v2749_v25 }
 0x48e   :  { %v1002_v29 = vsub.f32 1.0, %v1001_v24  ;;  %vm1027_vm2 = vmor %vm1025_vm1, %vm1026_vm15 }
 0x48f   :  { %v1022_v53 = vsub.f32 1.0, %v1021_v2 }
 0x490   :  { %v1003_v8 = vmul.f32 %v2371_v32, %v1002_v29 }
 0x491   :  { %v1023_v46 = vmul.f32 %v2373_v18, %v1022_v53 }
 0x492   :  { %v1004_v35 = vadd.f32 %v2371_v32, %v1003_v8 }
 0x493   :  { %v1024_v15 = vadd.f32 %v2373_v18, %v1023_v46 }
 0x494   :  { %v1008_v21 = vsel %vm1007_vm13, %v2371_v32, %v1004_v35 }
 0x495   :  { %v1013_v45 = vsel %vm1010_vm14, %v1012_v4, %v1008_v21  ;;  %v1028_v19 = vsel %vm1027_vm2, %v2373_v18, %v1024_v15 }
 0x496   :  { %v1035_v57 = vmul.f32 %v1013_v45, %v992_v33  ;;  %v1033_v44 = vsel %vm1030_vm3, %v1032_v28, %v1028_v19 }
 0x498   :  { %v1036_v6 = vadd.f32 %v1035_v57, %v205_v14 }
 0x49a   :  { %2374 = vtanh.f32 %v1036_v6 }
 0x4a0   :  { %v2375_v40 = vpop.eup %2374 }
 0x4a1   :  { %v1038_v11 = vsub.f32 %v2955_v39, %v2375_v40 }
 0x4a3   :  { %v1039_v49 = vmul.f32 %v1038_v11, %v1033_v44 }
 0x4a5   :  { %v1040_v51 = vadd.f32 %v2375_v40, %v1039_v49 }
 0x4a7   :  { %v1047_v16 = vpack.c.bf16 %v1040_v51, %v1040_v51 }
 0x4a9   :  { %2196 = vmatmul.msk.bf16.vlgmr.msra.gmra.mxu2 %vm112_vm0, %v1047_v16  ;;  %2197 = vmatmul.msk.bf16.vlgmr.msra.gmra.mxu3 %vm112_vm0, %v1047_v16 }
 0x4aa   :  { %2198 = vmatmul.msk.bf16.vlgmr.msrb.gmra.mxu0 %vm112_vm0, %v1047_v16 }
 0x527   :  { %v1086_v10 = vpop.f32.mrf.mxu0 }
 0x528   :  { %v1087_v19 = vadd.f32 %v1086_v10, %v2761_v17 }
 0x52c   :  { %v1060_v0 = vpop.f32.mrf.mxu2  ;;  %v1073_v59 = vpop.f32.mrf.mxu3 }
 0x52d   :  { %v1061_v39 = vadd.f32 %v1060_v0, %v2757_v38  ;;  %v1074_v32 = vadd.f32 %v1073_v59, %v2747_v22 }
 0x52f   :  { %v1090_v18 = vadd.f32 %v1061_v39, %v150_v23  ;;  %v1110_v24 = vadd.f32 %v1074_v32, %v179_v41  ;;  %v1088_v29 = vpop.f32.mrf.mxu0 }
 0x531   :  { %v2199_v2 = vmul.f32 -1.442695, %v1090_v18  ;;  %v2200_v26 = vmul.f32 -1.442695, %v1110_v24 }
 0x533   :  { %2376 = vpow2.f32 %v2199_v2  ;;  %v152_v2 = vadd.f32 %v2834_v37, %v2755_v34  ;;  %v2306_v34 = vld [vmem:[%s3275_s5 + $0x20] sm:$0xf0]  ;;  %v2228_v37 = vld [vmem:[%s3275_s5 + $0x20] sm:$0xf] }
 0x534   :  { %2378 = vpow2.f32 %v2200_v26  ;;  %v1062_v8 = vpop.f32.mrf.mxu2  ;;  %v1075_v48 = vpop.f32.mrf.mxu3 }
 0x539   :  { %v2377_v35 = vpop.eup %2376 }
 0x53a   :  { %v2379_v53 = vpop.eup %2378  ;;  %v1094_v4 = vadd.f32 1.0, %v2377_v35  ;;  %v181_v35 = vadd.f32 %v2691_v56, %v2749_v25 }
 0x53b   :  { %v1114_v54 = vadd.f32 1.0, %v2379_v53 }
 0x53c   :  { %2380 = vrcp.f32 %v1094_v4  ;;  %v1106_v14 = vand.u32 2147483648, %v1094_v4  ;;  %v1104_v6 = vand.u32 2147483647, %v1094_v4  ;;  %vm1100_vm5 = vweird.f32 %v1094_v4 }
 0x53d   :  { %2382 = vrcp.f32 %v1114_v54  ;;  %v1126_v0 = vand.u32 2147483648, %v1114_v54  ;;  %vm1120_vm9 = vweird.f32 %v1114_v54  ;;  %v1124_v59 = vand.u32 2147483647, %v1114_v54 }
 0x53e   :  { %v1107_v55 = vor.u32 1.1754944e-38, %v1106_v14  ;;  %vm1105_vm7 = vcmp.eq.f32.partialorder %v1104_v6, 8.507059e+37 }
 0x53f   :  { %v1127_v39 = vor.u32 1.1754944e-38, %v1126_v0  ;;  %vm1125_vm11 = vcmp.eq.f32.partialorder %v1124_v59, 8.507059e+37 }
 0x542   :  { %v2381_v13 = vpop.eup %2380 }
 0x543   :  { %v2383_v33 = vpop.eup %2382  ;;  %v1096_v21 = vmul.f32 %v2381_v13, %v1094_v4  ;;  %vm1101_vm4 = vweird.f32 %v2381_v13 }
 0x544   :  { %v1116_v57 = vmul.f32 %v2383_v33, %v1114_v54  ;;  %vm1102_vm6 = vmor %vm1100_vm5, %vm1101_vm4  ;;  %vm1121_vm8 = vweird.f32 %v2383_v33 }
 0x545   :  { %v1097_v45 = vsub.f32 1.0, %v1096_v21  ;;  %vm1122_vm10 = vmor %vm1120_vm9, %vm1121_vm8  ;;  %v2220_v21 = vld [vmem:[%s3275_s5 + $0x18] sm:$0xf] }
 0x546   :  { %v1117_v7 = vsub.f32 1.0, %v1116_v57  ;;  %v3007_v25 = vor.u32 %v2306_v34, %v2220_v21 }
 0x547   :  { %v1098_v46 = vmul.f32 %v2381_v13, %v1097_v45  ;;  %v2307_v45 = vld [vmem:[%s3275_s5 + $0x28] sm:$0xf0] }
 0x548   :  { %v1118_v44 = vmul.f32 %v2383_v33, %v1117_v7  ;;  %v3020_v6 = vor.u32 %v2307_v45, %v2228_v37  ;;  %1293 = vmatpush.bf16.msra.mxu0 %v3007_v25  ;;  %1388 = vmatpush.bf16.msra.mxu3 %v3007_v25  ;;  %v2303_v7 = vld [vmem:[%s3275_s5 + $0x8] sm:$0xf0] }
 0x549   :  { %v1099_v15 = vadd.f32 %v2381_v13, %v1098_v46 }
 0x54a   :  { %v1119_v16 = vadd.f32 %v2383_v33, %v1118_v44  ;;  %1319 = vmatpush.bf16.msra.mxu2 %v3020_v6  ;;  %v2216_v44 = vld [vmem:[%s3275_s5 + $0x8] sm:$0xf] }
 0x54b   :  { %v1103_v40 = vsel %vm1102_vm6, %v2381_v13, %v1099_v15 }
 0x54c   :  { %v1108_v28 = vsel %vm1105_vm7, %v1107_v55, %v1103_v40  ;;  %v1123_v41 = vsel %vm1122_vm10, %v2383_v33, %v1119_v16  ;;  %v2208_v55 = vld [vmem:[%s3275_s5] sm:$0xf]  ;;  %v2210_v40 = vld [vmem:[%s3275_s5 + $0xc] sm:$0xf0] }
 0x54d   :  { %v1130_v11 = vmul.f32 %v1108_v28, %v1087_v19  ;;  %v1128_v10 = vsel %vm1125_vm11, %v1127_v39, %v1123_v41  ;;  %v2302_v19 = vld [vmem:[%s3275_s5 + $0x4] sm:$0xf]  ;;  %v3038_v28 = vor.u32 %v2303_v7, %v2208_v55  ;;  %v330_v7 = vadd.f32 %v2695_v58, %v2707_v62 }
 0x54f   :  { %v1131_v49 = vadd.f32 %v1130_v11, %v2742_v20  ;;  %v3040_v11 = vor.u32 %v2302_v19, %v2210_v40  ;;  %1294 = vmatpush.bf16.msra.mxu0 %v3038_v28  ;;  %1389 = vmatpush.bf16.msra.mxu3 %v3038_v28  ;;  %v358_v19 = vadd.f32 %v2836_v30, %v2853_v63 }
 0x551   :  { %2384 = vtanh.f32 %v1131_v49  ;;  %v2304_v49 = vld [vmem:[%s3275_s5 + $0x10] sm:$0xf0] }
 0x552   :  { %v3048_v0 = vor.u32 %v2304_v49, %v2216_v44 }
 0x554   :  { %1320 = vmatpush.bf16.msra.mxu2 %v3048_v0 }
 0x557   :  { %v2385_v23 = vpop.eup %2384 }
 0x558   :  { %v1133_v32 = vsub.f32 %v1040_v51, %v2385_v23 }
 0x55a   :  { %v1134_v18 = vmul.f32 %v1133_v32, %v1128_v10 }
 0x55c   :  { %v2985_v24 = vadd.f32 %v2385_v23, %v1134_v18 }
 0x55e   :  { %v1142_v29 = vpack.c.bf16 %v2985_v24, %v2985_v24 }
 0x560   :  { %2201 = vmatmul.msk.bf16.vlgmr.msrb.gmra.mxu1 %vm112_vm0, %v1142_v29  ;;  %2202 = vmatmul.msk.bf16.vlgmr.msrb.gmra.mxu2 %vm112_vm0, %v1142_v29 }
 0x561   :  { %2203 = vmatmul.msk.bf16.vlgmr.msrb.gmra.mxu3 %vm112_vm0, %v1142_v29  ;;  %1484 = vmatpush.bf16.msrb.mxu2 %v3007_v25 }
 0x565   :  { %1485 = vmatpush.bf16.msrb.mxu2 %v3038_v28 }
 0x5dd   :  { %v1155_v20 = vpop.f32.mrf.mxu1 }
 0x5de   :  { %v1156_v26 = vadd.f32 %v1155_v20, %v2757_v38  ;;  %v2305_v38 = vld [vmem:[%s3275_s5 + $0x1c] sm:$0xf] }
 0x5e0   :  { %v1185_v51 = vadd.f32 %v1156_v26, %v152_v2 }
 0x5e2   :  { %v2204_v8 = vmul.f32 -1.442695, %v1185_v51 }
 0x5e3   :  { %v1168_v48 = vpop.f32.mrf.mxu2 }
 0x5e4   :  { %2386 = vpow2.f32 %v2204_v8  ;;  %v1169_v53 = vadd.f32 %v1168_v48, %v2747_v22  ;;  %v1181_v4 = vpop.f32.mrf.mxu3  ;;  %v2222_v22 = vld [vmem:[%s3275_s5 + $0x24] sm:$0xf0] }
 0x5e5   :  { %v1157_v54 = vpop.f32.mrf.mxu1  ;;  %v3018_v46 = vor.u32 %v2305_v38, %v2222_v22  ;;  %v1182_v8 = vadd.f32 %v1181_v4, %v2761_v17 }
 0x5e6   :  { %v1205_v13 = vadd.f32 %v1169_v53, %v181_v35  ;;  %v210_v53 = vadd.f32 %v2751_v27, %v2721_v5  ;;  %v2044_v27 = vld [vmem:[%s3274_s7 + $0x3] ss:$8 sm:$0x7] }
 0x5e7   :  { %1306 = vmatpush.bf16.msra.mxu1 %v3018_v46  ;;  %1401 = vmatpush.bf16.msrb.mxu0 %v3018_v46 }
 0x5e8   :  { %v2205_v33 = vmul.f32 -1.442695, %v1205_v13  ;;  %1497 = vmatpush.bf16.msrb.mxu3 %v3018_v46 }
 0x5ea   :  { %v2387_v56 = vpop.eup %2386  ;;  %2388 = vpow2.f32 %v2205_v33 }
 0x5eb   :  { %v1189_v14 = vadd.f32 1.0, %v2387_v56  ;;  %v1170_v57 = vpop.f32.mrf.mxu2  ;;  %1307 = vmatpush.bf16.msra.mxu1 %v3040_v11  ;;  %1402 = vmatpush.bf16.msrb.mxu0 %v3040_v11 }
 0x5ec   :  { %v1183_v15 = vpop.f32.mrf.mxu3  ;;  %1498 = vmatpush.bf16.msrb.mxu3 %v3040_v11  ;;  %v3084_v57 = vperm.slane %v2044_v27, 1 }
 0x5ed   :  { %2390 = vrcp.f32 %v1189_v14  ;;  %v1201_v32 = vand.u32 2147483648, %v1189_v14  ;;  %v1199_v18 = vand.u32 2147483647, %v1189_v14  ;;  %vm1195_vm13 = vweird.f32 %v1189_v14 }
 0x5ef   :  { %1414 = vmatpush.bf16.msrb.mxu1 %v3020_v6  ;;  %v1202_v26 = vor.u32 1.1754944e-38, %v1201_v32  ;;  %vm1200_vm15 = vcmp.eq.f32.partialorder %v1199_v18, 8.507059e+37 }
 0x5f0   :  { %v2389_v16 = vpop.eup %2388 }
 0x5f1   :  { %v1209_v59 = vadd.f32 1.0, %v2389_v16 }
 0x5f3   :  { %v2391_v41 = vpop.eup %2390  ;;  %2392 = vrcp.f32 %v1209_v59  ;;  %1415 = vmatpush.bf16.msrb.mxu1 %v3048_v0  ;;  %v1221_v34 = vand.u32 2147483648, %v1209_v59  ;;  %vm1215_vm2 = vweird.f32 %v1209_v59  ;;  %v1219_v38 = vand.u32 2147483647, %v1209_v59 }
 0x5f4   :  { %v1191_v23 = vmul.f32 %v2391_v41, %v1189_v14  ;;  %vm1196_vm12 = vweird.f32 %v2391_v41 }
 0x5f5   :  { %vm1197_vm14 = vmor %vm1195_vm13, %vm1196_vm12  ;;  %v1222_v37 = vor.u32 1.1754944e-38, %v1221_v34  ;;  %vm1220_vm4 = vcmp.eq.f32.partialorder %v1219_v38, 8.507059e+37 }
 0x5f6   :  { %v1192_v39 = vsub.f32 1.0, %v1191_v23 }
 0x5f8   :  { %v1193_v10 = vmul.f32 %v2391_v41, %v1192_v39 }
 0x5f9   :  { %v2393_v29 = vpop.eup %2392 }
 0x5fa   :  { %v1211_v20 = vmul.f32 %v2393_v29, %v1209_v59  ;;  %v1194_v2 = vadd.f32 %v2391_v41, %v1193_v10  ;;  %vm1216_vm1 = vweird.f32 %v2393_v29 }
 0x5fb   :  { %vm1217_vm3 = vmor %vm1215_vm2, %vm1216_vm1 }
 0x5fc   :  { %v1212_v51 = vsub.f32 1.0, %v1211_v20  ;;  %v1198_v48 = vsel %vm1197_vm14, %v2391_v41, %v1194_v2 }
 0x5fd   :  { %v1203_v35 = vsel %vm1200_vm15, %v1202_v26, %v1198_v48 }
 0x5fe   :  { %v1225_v54 = vmul.f32 %v1203_v35, %v1182_v8  ;;  %v1213_v13 = vmul.f32 %v2393_v29, %v1212_v51  ;;  %v3092_v35 = vperm.slane %v2044_v27, 2 }
 0x600   :  { %v1226_v33 = vadd.f32 %v1225_v54, %v210_v53  ;;  %v1214_v21 = vadd.f32 %v2393_v29, %v1213_v13 }
 0x602   :  { %2394 = vtanh.f32 %v1226_v33  ;;  %v1218_v56 = vsel %vm1217_vm3, %v2393_v29, %v1214_v21 }
 0x603   :  { %v1223_v4 = vsel %vm1220_vm4, %v1222_v37, %v1218_v56 }
 0x608   :  { %v2395_v22 = vpop.eup %2394 }
 0x609   :  { %v1228_v17 = vsub.f32 %v2985_v24, %v2395_v22  ;;  %v3082_v24 = vperm.slane %v2044_v27, 0 }
 0x60b   :  { %v1229_v45 = vmul.f32 %v1228_v17, %v1223_v4 }
 0x60d   :  { %v3066_v14 = vadd.f32 %v2395_v22, %v1229_v45  ;;  %v386_v22 = vadd.f32 %v2887_v36, %v2895_v47 }
 0x60f   :  { %v1244_v5 = vpack.c.bf16 %v3066_v14, %v3066_v14 }
 0x611   :  { %2230 = vmatmul.msk.bf16.vlgmr.msra.gmra.mxu0 %vm112_vm0, %v1244_v5  ;;  %2231 = vmatmul.msk.bf16.vlgmr.msra.gmra.mxu1 %vm112_vm0, %v1244_v5 }
 0x612   :  { %2232 = vmatmul.msk.bf16.vlgmr.msra.gmra.mxu2 %vm112_vm0, %v1244_v5  ;;  %1510 = vmatpush.bf16.msra.mxu0 %v3020_v6 }
 0x613   :  { %1580 = vmatpush.bf16.msra.mxu1 %v3007_v25  ;;  %1593 = vmatpush.bf16.msra.mxu2 %v3018_v46 }
 0x616   :  { %1511 = vmatpush.bf16.msra.mxu0 %v3048_v0 }
 0x617   :  { %1581 = vmatpush.bf16.msra.mxu1 %v3038_v28  ;;  %1594 = vmatpush.bf16.msra.mxu2 %v3040_v11 }
 0x68e   :  { %v1296_v15 = vpop.f32.mrf.mxu0  ;;  %v1309_v55 = vpop.f32.mrf.mxu1 }
 0x68f   :  { %v1297_v40 = vadd.f32 %v1296_v15, %v3082_v24  ;;  %v1310_v44 = vadd.f32 %v1309_v55, %v3084_v57 }
 0x691   :  { %v1326_v49 = vadd.f32 %v1297_v40, %v330_v7  ;;  %v1346_v16 = vadd.f32 %v1310_v44, %v358_v19 }
 0x693   :  { %v2233_v59 = vmul.f32 -1.442695, %v1326_v49  ;;  %v2234_v41 = vmul.f32 -1.442695, %v1346_v16  ;;  %v360_v16 = vadd.f32 %v2838_v43, %v2853_v63 }
 0x695   :  { %2396 = vpow2.f32 %v2233_v59  ;;  %v1322_v23 = vpop.f32.mrf.mxu2 }
 0x696   :  { %2398 = vpow2.f32 %v2234_v41  ;;  %v1298_v39 = vpop.f32.mrf.mxu0  ;;  %v1311_v32 = vpop.f32.mrf.mxu1  ;;  %v1323_v34 = vadd.f32 %v1322_v23, %v3092_v35 }
 0x69b   :  { %v2397_v10 = vpop.eup %2396 }
 0x69c   :  { %v2399_v18 = vpop.eup %2398  ;;  %v1330_v29 = vadd.f32 1.0, %v2397_v10  ;;  %v332_v10 = vadd.f32 %v2699_v60, %v2707_v62 }
 0x69d   :  { %v1350_v58 = vadd.f32 1.0, %v2399_v18  ;;  %v1324_v20 = vpop.f32.mrf.mxu2 }
 0x69e   :  { %2400 = vrcp.f32 %v1330_v29  ;;  %v1342_v48 = vand.u32 2147483648, %v1330_v29  ;;  %v1340_v54 = vand.u32 2147483647, %v1330_v29  ;;  %vm1336_vm6 = vweird.f32 %v1330_v29 }
 0x69f   :  { %2402 = vrcp.f32 %v1350_v58  ;;  %v1362_v5 = vand.u32 2147483648, %v1350_v58  ;;  %vm1356_vm10 = vweird.f32 %v1350_v58  ;;  %v1360_v27 = vand.u32 2147483647, %v1350_v58 }
 0x6a0   :  { %v1343_v21 = vor.u32 1.1754944e-38, %v1342_v48  ;;  %vm1341_vm8 = vcmp.eq.f32.partialorder %v1340_v54, 8.507059e+37 }
 0x6a1   :  { %v1363_v7 = vor.u32 1.1754944e-38, %v1362_v5  ;;  %vm1361_vm12 = vcmp.eq.f32.partialorder %v1360_v27, 8.507059e+37 }
 0x6a4   :  { %v2401_v30 = vpop.eup %2400 }
 0x6a5   :  { %v2403_v2 = vpop.eup %2402  ;;  %v1332_v26 = vmul.f32 %v2401_v30, %v1330_v29  ;;  %vm1337_vm5 = vweird.f32 %v2401_v30 }
 0x6a6   :  { %v1352_v8 = vmul.f32 %v2403_v2, %v1350_v58  ;;  %vm1338_vm7 = vmor %vm1336_vm6, %vm1337_vm5  ;;  %vm1357_vm9 = vweird.f32 %v2403_v2 }
 0x6a7   :  { %v1333_v51 = vsub.f32 1.0, %v1332_v26  ;;  %vm1358_vm11 = vmor %vm1356_vm10, %vm1357_vm9 }
 0x6a8   :  { %v1353_v33 = vsub.f32 1.0, %v1352_v8 }
 0x6a9   :  { %v1334_v53 = vmul.f32 %v2401_v30, %v1333_v51 }
 0x6aa   :  { %v1354_v17 = vmul.f32 %v2403_v2, %v1353_v33 }
 0x6ab   :  { %v1335_v13 = vadd.f32 %v2401_v30, %v1334_v53 }
 0x6ac   :  { %v1355_v45 = vadd.f32 %v2403_v2, %v1354_v17 }
 0x6ad   :  { %v1339_v38 = vsel %vm1338_vm7, %v2401_v30, %v1335_v13 }
 0x6ae   :  { %v1344_v56 = vsel %vm1341_vm8, %v1343_v21, %v1339_v38  ;;  %v1359_v15 = vsel %vm1358_vm11, %v2403_v2, %v1355_v45  ;;  %v388_v45 = vadd.f32 %v2891_v42, %v2895_v47 }
 0x6af   :  { %v1366_v37 = vmul.f32 %v1344_v56, %v1323_v34  ;;  %v1364_v40 = vsel %vm1361_vm12, %v1363_v7, %v1359_v15 }
 0x6b1   :  { %v1367_v4 = vadd.f32 %v1366_v37, %v386_v22 }
 0x6b3   :  { %2404 = vtanh.f32 %v1367_v4 }
 0x6b9   :  { %v2405_v55 = vpop.eup %2404 }
 0x6ba   :  { %v1369_v19 = vsub.f32 %v3066_v14, %v2405_v55 }
 0x6bc   :  { %v1370_v44 = vmul.f32 %v1369_v19, %v1364_v40 }
 0x6be   :  { %v3098_v49 = vadd.f32 %v2405_v55, %v1370_v44 }
 0x6c0   :  { %1372 = vst.msk [vmem:[#allocation4] sm:$0xff] %vm112_vm0, %v3098_v49  ;;  %v1378_v36 = vpack.c.bf16 %v3098_v49, %v3098_v49 }
 0x6c2   :  { %2235 = vmatmul.msk.bf16.vlgmr.msra.gmra.mxu3 %vm112_vm0, %v1378_v36  ;;  %2236 = vmatmul.msk.bf16.vlgmr.msrb.gmra.mxu0 %vm112_vm0, %v1378_v36 }
 0x6c3   :  { %2237 = vmatmul.msk.bf16.vlgmr.msrb.gmra.mxu1 %vm112_vm0, %v1378_v36  ;;  %1606 = vmatpush.bf16.msra.mxu3 %v3020_v6 }
 0x6c4   :  { %1676 = vmatpush.bf16.msrb.mxu0 %v3007_v25  ;;  %1689 = vmatpush.bf16.msrb.mxu1 %v3018_v46 }
 0x6c7   :  { %1607 = vmatpush.bf16.msra.mxu3 %v3048_v0 }
 0x6c8   :  { %1677 = vmatpush.bf16.msrb.mxu0 %v3038_v28  ;;  %1690 = vmatpush.bf16.msrb.mxu1 %v3040_v11 }
 0x73f   :  { %v1404_v14 = vpop.f32.mrf.mxu0 }
 0x740   :  { %v1405_v59 = vadd.f32 %v1404_v14, %v3084_v57  ;;  %v1417_v41 = vpop.f32.mrf.mxu1 }
 0x741   :  { %v1418_v37 = vadd.f32 %v1417_v41, %v3092_v35 }
 0x742   :  { %v1441_v23 = vadd.f32 %v1405_v59, %v360_v16 }
 0x744   :  { %v2239_v39 = vmul.f32 -1.442695, %v1441_v23 }
 0x745   :  { %v1391_v32 = vpop.f32.mrf.mxu3 }
 0x746   :  { %v1392_v18 = vadd.f32 %v1391_v32, %v3082_v24  ;;  %2406 = vpow2.f32 %v2239_v39 }
 0x747   :  { %v1406_v29 = vpop.f32.mrf.mxu0 }
 0x748   :  { %v1421_v58 = vadd.f32 %v1392_v18, %v332_v10  ;;  %v1419_v20 = vpop.f32.mrf.mxu1 }
 0x74a   :  { %v2238_v30 = vmul.f32 -1.442695, %v1421_v58 }
 0x74c   :  { %2408 = vpow2.f32 %v2238_v30  ;;  %v2407_v26 = vpop.eup %2406 }
 0x74d   :  { %v1393_v2 = vpop.f32.mrf.mxu3  ;;  %v1445_v51 = vadd.f32 1.0, %v2407_v26 }
 0x74f   :  { %v1457_v7 = vand.u32 2147483648, %v1445_v51  ;;  %vm1451_vm3 = vweird.f32 %v1445_v51  ;;  %v1455_v19 = vand.u32 2147483647, %v1445_v51 }
 0x751   :  { %v1458_v36 = vor.u32 1.1754944e-38, %v1457_v7  ;;  %vm1456_vm5 = vcmp.eq.f32.partialorder %v1455_v19, 8.507059e+37 }
 0x752   :  { %v2409_v43 = vpop.eup %2408 }
 0x753   :  { %v1425_v8 = vadd.f32 1.0, %v2409_v43 }
 0x755   :  { %2410 = vrcp.f32 %v1425_v8  ;;  %v1437_v33 = vand.u32 2147483648, %v1425_v8  ;;  %v1435_v34 = vand.u32 2147483647, %v1425_v8  ;;  %vm1431_vm14 = vweird.f32 %v1425_v8 }
 0x756   :  { %2412 = vrcp.f32 %v1445_v51 }
 0x757   :  { %v1438_v22 = vor.u32 1.1754944e-38, %v1437_v33  ;;  %vm1436_vm1 = vcmp.eq.f32.partialorder %v1435_v34, 8.507059e+37 }
 0x75b   :  { %v2411_v48 = vpop.eup %2410 }
 0x75c   :  { %v2413_v53 = vpop.eup %2412  ;;  %v1427_v54 = vmul.f32 %v2411_v48, %v1425_v8  ;;  %vm1432_vm13 = vweird.f32 %v2411_v48 }
 0x75d   :  { %v1447_v60 = vmul.f32 %v2413_v53, %v1445_v51  ;;  %vm1433_vm15 = vmor %vm1431_vm14, %vm1432_vm13  ;;  %vm1452_vm2 = vweird.f32 %v2413_v53 }
 0x75e   :  { %v1428_v13 = vsub.f32 1.0, %v1427_v54  ;;  %vm1453_vm4 = vmor %vm1451_vm3, %vm1452_vm2 }
 0x75f   :  { %v1448_v56 = vsub.f32 1.0, %v1447_v60 }
 0x760   :  { %v1429_v21 = vmul.f32 %v2411_v48, %v1428_v13 }
 0x761   :  { %v1449_v27 = vmul.f32 %v2413_v53, %v1448_v56 }
 0x762   :  { %v1430_v38 = vadd.f32 %v2411_v48, %v1429_v21 }
 0x763   :  { %v1450_v55 = vadd.f32 %v2413_v53, %v1449_v27 }
 0x764   :  { %v1434_v17 = vsel %vm1433_vm15, %v2411_v48, %v1430_v38 }
 0x765   :  { %v1439_v4 = vsel %vm1436_vm1, %v1438_v22, %v1434_v17  ;;  %v1454_v40 = vsel %vm1453_vm4, %v2413_v53, %v1450_v55 }
 0x766   :  { %v1461_v5 = vmul.f32 %v1439_v4, %v1418_v37  ;;  %v1459_v16 = vsel %vm1456_vm5, %v1458_v36, %v1454_v40 }
 0x768   :  { %v1462_v15 = vadd.f32 %v1461_v5, %v388_v45 }
 0x76a   :  { %2414 = vtanh.f32 %v1462_v15 }
 0x770   :  { %v2415_v44 = vpop.eup %2414 }
 0x771   :  { %v1464_v14 = vsub.f32 %v3098_v49, %v2415_v44 }
 0x773   :  { %v1465_v59 = vmul.f32 %v1464_v14, %v1459_v16 }
 0x775   :  { %v3123_v41 = vadd.f32 %v2415_v44, %v1465_v59 }
 0x777   :  { %1468 = vst.msk [vmem:[#allocation4 + $0x8] sm:$0xff] %vm112_vm0, %v3123_v41  ;;  %v1474_v42 = vpack.c.bf16 %v3123_v41, %v3123_v41 }
 0x779   :  { %2240 = vmatmul.msk.bf16.vlgmr.msrb.gmra.mxu2 %vm112_vm0, %v1474_v42  ;;  %2241 = vmatmul.msk.bf16.vlgmr.msrb.gmra.mxu3 %vm112_vm0, %v1474_v42 }
 0x77a   :  { %2242 = vmatmul.msk.bf16.vlgmr.msra.gmra.mxu0 %vm112_vm0, %v1474_v42  ;;  %1702 = vmatpush.bf16.msrb.mxu2 %v3020_v6 }
 0x77b   :  { %1772 = vmatpush.bf16.msrb.mxu3 %v3007_v25  ;;  %1785 = vmatpush.bf16.msra.mxu0 %v3018_v46 }
 0x77e   :  { %1703 = vmatpush.bf16.msrb.mxu2 %v3048_v0 }
 0x77f   :  { %1773 = vmatpush.bf16.msrb.mxu3 %v3038_v28  ;;  %1786 = vmatpush.bf16.msra.mxu0 %v3040_v11 }
 0x7f7   :  { %v1513_v49 = vpop.f32.mrf.mxu0 }
 0x7f8   :  { %v1514_v22 = vadd.f32 %v1513_v49, %v3092_v35 }
 0x7fc   :  { %v1487_v23 = vpop.f32.mrf.mxu2  ;;  %v1500_v39 = vpop.f32.mrf.mxu3 }
 0x7fd   :  { %v1488_v32 = vadd.f32 %v1487_v23, %v3082_v24  ;;  %v1501_v10 = vadd.f32 %v1500_v39, %v3084_v57 }
 0x7ff   :  { %v1517_v18 = vadd.f32 %v1488_v32, %v2712_v1  ;;  %v1537_v29 = vadd.f32 %v1501_v10, %v2856_v12  ;;  %v1515_v58 = vpop.f32.mrf.mxu0 }
 0x801   :  { %v2243_v20 = vmul.f32 -1.442695, %v1517_v18  ;;  %v2244_v30 = vmul.f32 -1.442695, %v1537_v29 }
 0x803   :  { %2416 = vpow2.f32 %v2243_v20 }
 0x804   :  { %2418 = vpow2.f32 %v2244_v30  ;;  %v1489_v2 = vpop.f32.mrf.mxu2  ;;  %v1502_v26 = vpop.f32.mrf.mxu3 }
 0x809   :  { %v2417_v43 = vpop.eup %2416 }
 0x80a   :  { %v2419_v51 = vpop.eup %2418  ;;  %v1521_v8 = vadd.f32 1.0, %v2417_v43 }
 0x80b   :  { %v1541_v48 = vadd.f32 1.0, %v2419_v51 }
 0x80c   :  { %2420 = vrcp.f32 %v1521_v8  ;;  %v1533_v1 = vand.u32 2147483648, %v1521_v8  ;;  %v1531_v21 = vand.u32 2147483647, %v1521_v8  ;;  %vm1527_vm7 = vweird.f32 %v1521_v8 }
 0x80d   :  { %2422 = vrcp.f32 %v1541_v48  ;;  %v1553_v15 = vand.u32 2147483648, %v1541_v48  ;;  %vm1547_vm11 = vweird.f32 %v1541_v48  ;;  %v1551_v55 = vand.u32 2147483647, %v1541_v48 }
 0x80e   :  { %v1534_v38 = vor.u32 1.1754944e-38, %v1533_v1  ;;  %vm1532_vm9 = vcmp.eq.f32.partialorder %v1531_v21, 8.507059e+37 }
 0x80f   :  { %v1554_v40 = vor.u32 1.1754944e-38, %v1553_v15  ;;  %vm1552_vm13 = vcmp.eq.f32.partialorder %v1551_v55, 8.507059e+37 }
 0x812   :  { %v2421_v53 = vpop.eup %2420 }
 0x813   :  { %v2423_v54 = vpop.eup %2422  ;;  %v1523_v13 = vmul.f32 %v2421_v53, %v1521_v8  ;;  %vm1528_vm6 = vweird.f32 %v2421_v53 }
 0x814   :  { %v1543_v33 = vmul.f32 %v2423_v54, %v1541_v48  ;;  %vm1529_vm8 = vmor %vm1527_vm7, %vm1528_vm6  ;;  %vm1548_vm10 = vweird.f32 %v2423_v54 }
 0x815   :  { %v1524_v60 = vsub.f32 1.0, %v1523_v13  ;;  %vm1549_vm12 = vmor %vm1547_vm11, %vm1548_vm10 }
 0x816   :  { %v1544_v56 = vsub.f32 1.0, %v1543_v33 }
 0x817   :  { %v1525_v12 = vmul.f32 %v2421_v53, %v1524_v60 }
 0x818   :  { %v1545_v45 = vmul.f32 %v2423_v54, %v1544_v56 }
 0x819   :  { %v1526_v34 = vadd.f32 %v2421_v53, %v1525_v12  ;;  %v393_v12 = vadd.f32 %v2908_v61, %v2895_v47 }
 0x81a   :  { %v1546_v27 = vadd.f32 %v2423_v54, %v1545_v45 }
 0x81b   :  { %v1530_v37 = vsel %vm1529_vm8, %v2421_v53, %v1526_v34 }
 0x81c   :  { %v1535_v17 = vsel %vm1532_vm9, %v1534_v38, %v1530_v37  ;;  %v1550_v7 = vsel %vm1549_vm12, %v2423_v54, %v1546_v27 }
 0x81d   :  { %v1557_v4 = vmul.f32 %v1535_v17, %v1514_v22  ;;  %v1555_v36 = vsel %vm1552_vm13, %v1554_v40, %v1550_v7 }
 0x81f   :  { %v1558_v5 = vadd.f32 %v1557_v4, %v2898_v50 }
 0x821   :  { %2424 = vtanh.f32 %v1558_v5 }
 0x827   :  { %v2425_v19 = vpop.eup %2424 }
 0x828   :  { %v1560_v44 = vsub.f32 %v3123_v41, %v2425_v19  ;;  %v337_v41 = vadd.f32 %v2716_v3, %v2707_v62 }
 0x82a   :  { %v1561_v14 = vmul.f32 %v1560_v44, %v1555_v36 }
 0x82c   :  { %v3145_v16 = vadd.f32 %v2425_v19, %v1561_v14 }
 0x82e   :  { %1564 = vst.msk [vmem:[#allocation4 + $0x10] sm:$0xff] %vm112_vm0, %v3145_v16  ;;  %v1570_v50 = vpack.c.bf16 %v3145_v16, %v3145_v16 }
 0x830   :  { %2245 = vmatmul.msk.bf16.vlgmr.msra.gmra.mxu1 %vm112_vm0, %v1570_v50  ;;  %2246 = vmatmul.msk.bf16.vlgmr.msra.gmra.mxu2 %vm112_vm0, %v1570_v50 }
 0x831   :  { %2247 = vmatmul.msk.bf16.vlgmr.msra.gmra.mxu3 %vm112_vm0, %v1570_v50  ;;  %1798 = vmatpush.bf16.msra.mxu1 %v3020_v6 }
 0x832   :  { %1868 = vmatpush.bf16.msra.mxu2 %v3007_v25  ;;  %1881 = vmatpush.bf16.msra.mxu3 %v3018_v46  ;;  %v365_v25 = vadd.f32 %v2863_v31, %v2853_v63 }
 0x835   :  { %1799 = vmatpush.bf16.msra.mxu1 %v3048_v0 }
 0x836   :  { %1869 = vmatpush.bf16.msra.mxu2 %v3038_v28  ;;  %1882 = vmatpush.bf16.msra.mxu3 %v3040_v11 }
 0x8ad   :  { %v1583_v59 = vpop.f32.mrf.mxu1 }
 0x8ae   :  { %v1584_v42 = vadd.f32 %v1583_v59, %v3082_v24 }
 0x8b0   :  { %v1613_v49 = vadd.f32 %v1584_v42, %v337_v41 }
 0x8b2   :  { %v2248_v23 = vmul.f32 -1.442695, %v1613_v49 }
 0x8b3   :  { %v1596_v39 = vpop.f32.mrf.mxu2 }
 0x8b4   :  { %2426 = vpow2.f32 %v2248_v23  ;;  %v1597_v46 = vadd.f32 %v1596_v39, %v3084_v57  ;;  %v1609_v32 = vpop.f32.mrf.mxu3 }
 0x8b5   :  { %v1585_v10 = vpop.f32.mrf.mxu1  ;;  %v1610_v60 = vadd.f32 %v1609_v32, %v3092_v35  ;;  %v2308_v32 = vld [vmem:[%s3276_s6] sm:$0xff] }
 0x8b6   :  { %v1633_v28 = vadd.f32 %v1597_v46, %v365_v25 }
 0x8b8   :  { %v2249_v18 = vmul.f32 -1.442695, %v1633_v28 }
 0x8ba   :  { %v2427_v11 = vpop.eup %2426  ;;  %2428 = vpow2.f32 %v2249_v18 }
 0x8bb   :  { %v1617_v29 = vadd.f32 1.0, %v2427_v11  ;;  %v1598_v58 = vpop.f32.mrf.mxu2 }
 0x8bc   :  { %v1611_v3 = vpop.f32.mrf.mxu3 }
 0x8bd   :  { %2430 = vrcp.f32 %v1617_v29  ;;  %v1629_v63 = vand.u32 2147483648, %v1617_v29  ;;  %v1627_v51 = vand.u32 2147483647, %v1617_v29  ;;  %vm1623_vm15 = vweird.f32 %v1617_v29 }
 0x8bf   :  { %v1630_v54 = vor.u32 1.1754944e-38, %v1629_v63  ;;  %vm1628_vm2 = vcmp.eq.f32.partialorder %v1627_v51, 8.507059e+37 }
 0x8c0   :  { %v2429_v20 = vpop.eup %2428 }
 0x8c1   :  { %v1637_v30 = vadd.f32 1.0, %v2429_v20 }
 0x8c3   :  { %v2431_v2 = vpop.eup %2430  ;;  %2432 = vrcp.f32 %v1637_v30  ;;  %v1649_v22 = vand.u32 2147483648, %v1637_v30  ;;  %vm1643_vm4 = vweird.f32 %v1637_v30  ;;  %v1647_v37 = vand.u32 2147483647, %v1637_v30 }
 0x8c4   :  { %v1619_v26 = vmul.f32 %v2431_v2, %v1617_v29  ;;  %vm1624_vm14 = vweird.f32 %v2431_v2 }
 0x8c5   :  { %vm1625_vm1 = vmor %vm1623_vm15, %vm1624_vm14  ;;  %v1650_v45 = vor.u32 1.1754944e-38, %v1649_v22  ;;  %vm1648_vm6 = vcmp.eq.f32.partialorder %v1647_v37, 8.507059e+37 }
 0x8c6   :  { %v1620_v43 = vsub.f32 1.0, %v1619_v26 }
 0x8c8   :  { %v1621_v31 = vmul.f32 %v2431_v2, %v1620_v43 }
 0x8c9   :  { %v2433_v8 = vpop.eup %2432 }
 0x8ca   :  { %v1639_v48 = vmul.f32 %v2433_v8, %v1637_v30  ;;  %v1622_v53 = vadd.f32 %v2431_v2, %v1621_v31  ;;  %vm1644_vm3 = vweird.f32 %v2433_v8  ;;  %v3285_v31 = vld [vmem:[#allocation9_spill] sm:$0xff] }
 0x8cb   :  { %vm1645_vm5 = vmor %vm1643_vm4, %vm1644_vm3 }
 0x8cc   :  { %v1640_v13 = vsub.f32 1.0, %v1639_v48  ;;  %v1626_v1 = vsel %vm1625_vm1, %v2431_v2, %v1622_v53 }
 0x8cd   :  { %v1631_v33 = vsel %vm1628_vm2, %v1630_v54, %v1626_v1 }
 0x8ce   :  { %v1653_v21 = vmul.f32 %v1631_v33, %v1610_v60  ;;  %v1641_v34 = vmul.f32 %v2433_v8, %v1640_v13 }
 0x8d0   :  { %v1654_v38 = vadd.f32 %v1653_v21, %v393_v12  ;;  %v1642_v56 = vadd.f32 %v2433_v8, %v1641_v34 }
 0x8d2   :  { %2434 = vtanh.f32 %v1654_v38  ;;  %v1646_v17 = vsel %vm1645_vm5, %v2433_v8, %v1642_v56  ;;  %v1951_v38 = vld [vmem:[#allocation4 + $0x8] sm:$0xff]  ;;  %v1950_v56 = vld [vmem:[#allocation4] sm:$0xff] }
 0x8d3   :  { %v1651_v27 = vsel %vm1648_vm6, %v1650_v45, %v1646_v17  ;;  %v1957_v22 = vpack.c.bf16 %v1951_v38, %v1950_v56  ;;  %v1952_v17 = vld [vmem:[#allocation4 + $0x10] sm:$0xff] }
 0x8d8   :  { %v2435_v4 = vpop.eup %2434 }
 0x8d9   :  { %v1656_v5 = vsub.f32 %v3145_v16, %v2435_v4 }
 0x8db   :  { %v1657_v15 = vmul.f32 %v1656_v5, %v1651_v27 }
 0x8dd   :  { %v3170_v55 = vadd.f32 %v2435_v4, %v1657_v15  ;;  %v3286_v15 = vld [vmem:[#allocation7_spill] sm:$0xff] }
 0x8df   :  { %1660 = vst.msk [vmem:[#allocation4 + $0x18] sm:$0xff] %vm112_vm0, %v3170_v55  ;;  %v1666_v61 = vpack.c.bf16 %v3170_v55, %v3170_v55 }
 0x8e1   :  { %2250 = vmatmul.msk.bf16.vlgmr.msrb.gmra.mxu0 %vm112_vm0, %v1666_v61  ;;  %2251 = vmatmul.msk.bf16.vlgmr.msrb.gmra.mxu1 %vm112_vm0, %v1666_v61 }
 0x8e2   :  { %2252 = vmatmul.msk.bf16.vlgmr.msrb.gmra.mxu2 %vm112_vm0, %v1666_v61  ;;  %1894 = vmatpush.bf16.msrb.mxu0 %v3020_v6 }
 0x8e6   :  { %1895 = vmatpush.bf16.msrb.mxu0 %v3048_v0  ;;  %v1953_v37 = vld [vmem:[#allocation4 + $0x18] sm:$0xff] }
 0x8e7   :  { %v1958_v4 = vpack.c.bf16 %v1953_v37, %v1952_v17 }
 0x95e   :  { %v1679_v7 = vpop.f32.mrf.mxu0  ;;  %v1692_v19 = vpop.f32.mrf.mxu1 }
 0x95f   :  { %v1680_v40 = vadd.f32 %v1679_v7, %v3082_v24  ;;  %v1693_v44 = vadd.f32 %v1692_v19, %v3084_v57  ;;  %v3287_v19 = vld [vmem:[#allocation5_spill] sm:$0xff] }
 0x961   :  { %v1709_v36 = vadd.f32 %v1680_v40, %v2727_v9  ;;  %v1729_v14 = vadd.f32 %v1693_v44, %v2867_v52  ;;  %v2309_v9 = vld [vmem:[%s3276_s6 + $0x8] sm:$0xff]  ;;  %v342_v40 = vadd.f32 %v3287_v19, %v2707_v62  ;;  %v3289_v19 = vld [vmem:[#allocation6_spill] sm:$0xff] }
 0x962   :  { %1995 = vmatpush.bf16.msrb.mxu1 %v2309_v9 }
 0x963   :  { %v2253_v16 = vmul.f32 -1.442695, %v1709_v36  ;;  %v2254_v50 = vmul.f32 -1.442695, %v1729_v14 }
 0x965   :  { %2436 = vpow2.f32 %v2253_v16  ;;  %v1705_v59 = vpop.f32.mrf.mxu2 }
 0x966   :  { %2438 = vpow2.f32 %v2254_v50  ;;  %v1681_v41 = vpop.f32.mrf.mxu0  ;;  %v1694_v42 = vpop.f32.mrf.mxu1  ;;  %1996 = vmatpush.bf16.msrb.mxu1 %v2308_v32  ;;  %v1706_v30 = vadd.f32 %v1705_v59, %v3092_v35  ;;  %v2467_v59 = vmov 0.0  }
 0x967   :  { %2017 = vst [vmem:[%s3277_s8] sm:$0xff] %v2467_v59  ;;  %v3216_v42 = vld [vmem:[%s3274_s7 + $0x4] ss:$0 sm:$0xff] }
 0x96b   :  { %v2437_v6 = vpop.eup %2436 }
 0x96c   :  { %v2439_v49 = vpop.eup %2438  ;;  %v1713_v0 = vadd.f32 1.0, %v2437_v6 }
 0x96d   :  { %v1733_v23 = vadd.f32 1.0, %v2439_v49  ;;  %v1707_v39 = vpop.f32.mrf.mxu2 }
 0x96e   :  { %2440 = vrcp.f32 %v1713_v0  ;;  %v1725_v18 = vand.u32 2147483648, %v1713_v0  ;;  %v1723_v29 = vand.u32 2147483647, %v1713_v0  ;;  %vm1719_vm8 = vweird.f32 %v1713_v0 }
 0x96f   :  { %2442 = vrcp.f32 %v1733_v23  ;;  %v1745_v48 = vand.u32 2147483648, %v1733_v23  ;;  %vm1739_vm12 = vweird.f32 %v1733_v23  ;;  %v1743_v53 = vand.u32 2147483647, %v1733_v23 }
 0x970   :  { %v1726_v20 = vor.u32 1.1754944e-38, %v1725_v18  ;;  %vm1724_vm10 = vcmp.eq.f32.partialorder %v1723_v29, 8.507059e+37 }
 0x971   :  { %v1746_v60 = vor.u32 1.1754944e-38, %v1745_v48  ;;  %vm1744_vm14 = vcmp.eq.f32.partialorder %v1743_v53, 8.507059e+37 }
 0x974   :  { %v2441_v25 = vpop.eup %2440 }
 0x975   :  { %v2443_v52 = vpop.eup %2442  ;;  %v1715_v46 = vmul.f32 %v2441_v25, %v1713_v0  ;;  %vm1720_vm7 = vweird.f32 %v2441_v25 }
 0x976   :  { %v1735_v28 = vmul.f32 %v2443_v52, %v1733_v23  ;;  %vm1721_vm9 = vmor %vm1719_vm8, %vm1720_vm7  ;;  %vm1740_vm11 = vweird.f32 %v2443_v52 }
 0x977   :  { %v1716_v10 = vsub.f32 1.0, %v1715_v46  ;;  %vm1741_vm13 = vmor %vm1739_vm12, %vm1740_vm11 }
 0x978   :  { %v1736_v3 = vsub.f32 1.0, %v1735_v28 }
 0x979   :  { %v1717_v11 = vmul.f32 %v2441_v25, %v1716_v10 }
 0x97a   :  { %v1737_v63 = vmul.f32 %v2443_v52, %v1736_v3 }
 0x97b   :  { %v1718_v58 = vadd.f32 %v2441_v25, %v1717_v11 }
 0x97c   :  { %v1738_v8 = vadd.f32 %v2443_v52, %v1737_v63 }
 0x97d   :  { %v1722_v2 = vsel %vm1721_vm9, %v2441_v25, %v1718_v58 }
 0x97e   :  { %v1727_v26 = vsel %vm1724_vm10, %v1726_v20, %v1722_v2  ;;  %v1742_v54 = vsel %vm1741_vm13, %v2443_v52, %v1738_v8 }
 0x97f   :  { %v1749_v43 = vmul.f32 %v1727_v26, %v1706_v30  ;;  %v1747_v33 = vsel %vm1744_vm14, %v1746_v60, %v1742_v54 }
 0x981   :  { %v1750_v51 = vadd.f32 %v1749_v43, %v3285_v31  ;;  %v3288_v31 = vld [vmem:[#allocation10_spill] sm:$0xff] }
 0x983   :  { %2444 = vtanh.f32 %v1750_v51  ;;  %v398_v51 = vadd.f32 %v3288_v31, %v2895_v47 }
 0x989   :  { %v2445_v13 = vpop.eup %2444 }
 0x98a   :  { %v1752_v1 = vsub.f32 %v3170_v55, %v2445_v13 }
 0x98c   :  { %v1753_v12 = vmul.f32 %v1752_v1, %v1747_v33 }
 0x98e   :  { %v3194_v21 = vadd.f32 %v2445_v13, %v1753_v12 }
 0x990   :  { %1756 = vst.msk [vmem:[#allocation4 + $0x20] sm:$0xff] %vm112_vm0, %v3194_v21  ;;  %v1762_v34 = vpack.c.bf16 %v3194_v21, %v3194_v21 }
 0x992   :  { %2255 = vmatmul.msk.bf16.vlgmr.msrb.gmra.mxu3 %vm112_vm0, %v1762_v34  ;;  %2256 = vmatmul.msk.bf16.vlgmr.msra.gmra.mxu0 %vm112_vm0, %v1762_v34 }
 0x993   :  { %2257 = vmatmul.msk.bf16.vlgmr.msra.gmra.mxu1 %vm112_vm0, %v1762_v34 }
 0x9a3   :  { %2273 = vmatmul.msk.bf16.vlgmr.msrb.gmra.mxu1 %vm112_vm0, %v1957_v22 }
 0x9b3   :  { %2274 = vmatmul.msk.bf16.gmra.mxu1 %vm112_vm0, %v1958_v4  ;;  %v1954_v4 = vld [vmem:[#allocation4 + $0x20] sm:$0xff] }
 0xa0f   :  { %v1788_v45 = vpop.f32.mrf.mxu0 }
 0xa10   :  { %v1789_v5 = vadd.f32 %v1788_v45, %v3084_v57  ;;  %v1801_v27 = vpop.f32.mrf.mxu1 }
 0xa11   :  { %v1802_v26 = vadd.f32 %v1801_v27, %v3092_v35 }
 0xa12   :  { %v1825_v55 = vadd.f32 %v1789_v5, %v3286_v15 }
 0xa14   :  { %v2259_v61 = vmul.f32 -1.442695, %v1825_v55 }
 0xa15   :  { %v1775_v7 = vpop.f32.mrf.mxu3 }
 0xa16   :  { %v1776_v44 = vadd.f32 %v1775_v7, %v3082_v24  ;;  %2446 = vpow2.f32 %v2259_v61 }
 0xa17   :  { %v1790_v36 = vpop.f32.mrf.mxu0 }
 0xa18   :  { %v1805_v14 = vadd.f32 %v1776_v44, %v342_v40  ;;  %v1803_v16 = vpop.f32.mrf.mxu1  ;;  %v3290_v44 = vld [vmem:[#allocation8_spill] sm:$0xff] }
 0xa1a   :  { %v2258_v50 = vmul.f32 -1.442695, %v1805_v14 }
 0xa1c   :  { %2448 = vpow2.f32 %v2258_v50  ;;  %v2447_v62 = vpop.eup %2446 }
 0xa1d   :  { %v1777_v41 = vpop.f32.mrf.mxu3  ;;  %v1829_v23 = vadd.f32 1.0, %v2447_v62 }
 0xa1f   :  { %v1841_v1 = vand.u32 2147483648, %v1829_v23  ;;  %vm1835_vm5 = vweird.f32 %v1829_v23  ;;  %v1839_v33 = vand.u32 2147483647, %v1829_v23 }
 0xa20   :  { %v1998_v6 = vpop.f32.mrf.mxu1 }
 0xa21   :  { %v1999_v49 = vadd.f32 %v1998_v6, %v3216_v42  ;;  %v1842_v47 = vor.u32 1.1754944e-38, %v1841_v1  ;;  %vm1840_vm7 = vcmp.eq.f32.partialorder %v1839_v33, 8.507059e+37 }
 0xa22   :  { %v2449_v0 = vpop.eup %2448 }
 0xa23   :  { %v1809_v39 = vadd.f32 1.0, %v2449_v0  ;;  %2018 = vst [vmem:[%s3277_s8 + $0x8] sm:$0xff] %v1999_v49 }
 0xa25   :  { %2450 = vrcp.f32 %v1809_v39  ;;  %v1821_v18 = vand.u32 2147483648, %v1809_v39  ;;  %v1819_v29 = vand.u32 2147483647, %v1809_v39  ;;  %vm1815_vm1 = vweird.f32 %v1809_v39 }
 0xa26   :  { %2452 = vrcp.f32 %v1829_v23 }
 0xa27   :  { %v1822_v2 = vor.u32 1.1754944e-38, %v1821_v18  ;;  %vm1820_vm3 = vcmp.eq.f32.partialorder %v1819_v29, 8.507059e+37 }
 0xa28   :  { %v2000_v9 = vpop.f32.mrf.mxu1 }
 0xa29   :  { %v2001_v25 = vadd.f32 %v2000_v9, %v3216_v42 }
 0xa2b   :  { %v2451_v52 = vpop.eup %2450  ;;  %2019 = vst [vmem:[%s3277_s8 + $0x10] sm:$0xff] %v2001_v25 }
 0xa2c   :  { %v2453_v46 = vpop.eup %2452  ;;  %v1811_v32 = vmul.f32 %v2451_v52, %v1809_v39  ;;  %vm1816_vm15 = vweird.f32 %v2451_v52 }
 0xa2d   :  { %v1831_v28 = vmul.f32 %v2453_v46, %v1829_v23  ;;  %vm1817_vm2 = vmor %vm1815_vm1, %vm1816_vm15  ;;  %vm1836_vm4 = vweird.f32 %v2453_v46 }
 0xa2e   :  { %v1812_v10 = vsub.f32 1.0, %v1811_v32  ;;  %vm1837_vm6 = vmor %vm1835_vm5, %vm1836_vm4 }
 0xa2f   :  { %v1832_v30 = vsub.f32 1.0, %v1831_v28 }
 0xa30   :  { %v1813_v11 = vmul.f32 %v2451_v52, %v1812_v10  ;;  %v2003_v58 = vpop.f32.mrf.mxu1 }
 0xa31   :  { %v2004_v3 = vadd.f32 %v2003_v58, %v3216_v42  ;;  %v1833_v48 = vmul.f32 %v2453_v46, %v1832_v30 }
 0xa32   :  { %v1814_v20 = vadd.f32 %v2451_v52, %v1813_v11 }
 0xa33   :  { %2020 = vst [vmem:[%s3277_s8 + $0x18] sm:$0xff] %v2004_v3  ;;  %v1834_v60 = vadd.f32 %v2453_v46, %v1833_v48 }
 0xa34   :  { %v1818_v43 = vsel %vm1817_vm2, %v2451_v52, %v1814_v20 }
 0xa35   :  { %v1823_v63 = vsel %vm1820_vm3, %v1822_v2, %v1818_v43  ;;  %v1838_v12 = vsel %vm1837_vm6, %v2453_v46, %v1834_v60 }
 0xa36   :  { %v1845_v8 = vmul.f32 %v1823_v63, %v1802_v26  ;;  %v1843_v56 = vsel %vm1840_vm7, %v1842_v47, %v1838_v12  ;;  %v3291_v26 = vld [vmem:[#allocation11_spill] sm:$0xff] }
 0xa38   :  { %v1846_v53 = vadd.f32 %v1845_v8, %v398_v51  ;;  %v2005_v54 = vpop.f32.mrf.mxu1 }
 0xa39   :  { %v2006_v13 = vadd.f32 %v2005_v54, %v3216_v42 }
 0xa3a   :  { %2454 = vtanh.f32 %v1846_v53 }
 0xa3b   :  { %2021 = vst [vmem:[%s3277_s8 + $0x20] sm:$0xff] %v2006_v13 }
 0xa40   :  { %v2455_v34 = vpop.eup %2454 }
 0xa41   :  { %v1848_v38 = vsub.f32 %v3194_v21, %v2455_v34 }
 0xa43   :  { %v1849_v22 = vmul.f32 %v1848_v38, %v1843_v56 }
 0xa45   :  { %v3238_v37 = vadd.f32 %v2455_v34, %v1849_v22 }
 0xa47   :  { %1852 = vst.msk [vmem:[#allocation4 + $0x28] sm:$0xff] %vm112_vm0, %v3238_v37  ;;  %v1858_v17 = vpack.c.bf16 %v3238_v37, %v3238_v37 }
 0xa49   :  { %2260 = vmatmul.msk.bf16.vlgmr.msra.gmra.mxu2 %vm112_vm0, %v1858_v17  ;;  %2261 = vmatmul.msk.bf16.vlgmr.msra.gmra.mxu3 %vm112_vm0, %v1858_v17 }
 0xa4a   :  { %2262 = vmatmul.msk.bf16.vlgmr.msrb.gmra.mxu0 %vm112_vm0, %v1858_v17 }
 0xa4e   :  { %v1955_v45 = vld [vmem:[#allocation4 + $0x28] sm:$0xff] }
 0xa4f   :  { %v1959_v5 = vpack.c.bf16 %v1955_v45, %v1954_v4 }
 0xa51   :  { %2275 = vmatmul.msk.bf16.gmra.mxu1 %vm112_vm0, %v1959_v5 }
 0xac7   :  { %v1897_v21 = vpop.f32.mrf.mxu0 }
 0xac8   :  { %v1898_v58 = vadd.f32 %v1897_v21, %v3092_v35 }
 0xacc   :  { %v1871_v27 = vpop.f32.mrf.mxu2  ;;  %v1884_v15 = vpop.f32.mrf.mxu3 }
 0xacd   :  { %v1872_v55 = vadd.f32 %v1871_v27, %v3082_v24  ;;  %v1885_v61 = vadd.f32 %v1884_v15, %v3084_v57 }
 0xace   :  { %v2008_v7 = vpop.f32.mrf.mxu1 }
 0xacf   :  { %v1901_v40 = vadd.f32 %v1872_v55, %v3289_v19  ;;  %v1921_v36 = vadd.f32 %v1885_v61, %v3290_v44  ;;  %v1899_v14 = vpop.f32.mrf.mxu0  ;;  %v2009_v16 = vadd.f32 %v2008_v7, %v3216_v42 }
 0xad1   :  { %v2263_v50 = vmul.f32 -1.442695, %v1901_v40  ;;  %v2264_v59 = vmul.f32 -1.442695, %v1921_v36  ;;  %2022 = vst [vmem:[%s3277_s8 + $0x28] sm:$0xff] %v2009_v16 }
 0xad3   :  { %2456 = vpow2.f32 %v2263_v50 }
 0xad4   :  { %2458 = vpow2.f32 %v2264_v59  ;;  %v1873_v41 = vpop.f32.mrf.mxu2  ;;  %v1886_v24 = vpop.f32.mrf.mxu3 }
 0xad6   :  { %v2010_v62 = vpop.f32.mrf.mxu1 }
 0xad7   :  { %v2011_v57 = vadd.f32 %v2010_v62, %v3216_v42 }
 0xad9   :  { %v2457_v6 = vpop.eup %2456  ;;  %2023 = vst [vmem:[%s3277_s8 + $0x30] sm:$0xff] %v2011_v57 }
 0xada   :  { %v2459_v49 = vpop.eup %2458  ;;  %v1905_v0 = vadd.f32 1.0, %v2457_v6 }
 0xadb   :  { %v1925_v23 = vadd.f32 1.0, %v2459_v49 }
 0xadc   :  { %2460 = vrcp.f32 %v1905_v0  ;;  %v1917_v46 = vand.u32 2147483648, %v1905_v0  ;;  %v1915_v28 = vand.u32 2147483647, %v1905_v0  ;;  %vm1911_vm9 = vweird.f32 %v1905_v0 }
 0xadd   :  { %2462 = vrcp.f32 %v1925_v23  ;;  %v1937_v31 = vand.u32 2147483648, %v1925_v23  ;;  %vm1931_vm13 = vweird.f32 %v1925_v23  ;;  %v1935_v51 = vand.u32 2147483647, %v1925_v23 }
 0xade   :  { %v1918_v11 = vor.u32 1.1754944e-38, %v1917_v46  ;;  %vm1916_vm11 = vcmp.eq.f32.partialorder %v1915_v28, 8.507059e+37 }
 0xadf   :  { %v1938_v53 = vor.u32 1.1754944e-38, %v1937_v31  ;;  %vm1936_vm15 = vcmp.eq.f32.partialorder %v1935_v51, 8.507059e+37 }
 0xae2   :  { %v2461_v39 = vpop.eup %2460 }
 0xae3   :  { %v2463_v9 = vpop.eup %2462  ;;  %v1907_v25 = vmul.f32 %v2461_v39, %v1905_v0  ;;  %vm1912_vm8 = vweird.f32 %v2461_v39 }
 0xae4   :  { %v1927_v32 = vmul.f32 %v2463_v9, %v1925_v23  ;;  %vm1913_vm10 = vmor %vm1911_vm9, %vm1912_vm8  ;;  %vm1932_vm12 = vweird.f32 %v2463_v9 }
 0xae5   :  { %v1908_v52 = vsub.f32 1.0, %v1907_v25  ;;  %vm1933_vm14 = vmor %vm1931_vm13, %vm1932_vm12 }
 0xae6   :  { %v1928_v29 = vsub.f32 1.0, %v1927_v32 }
 0xae7   :  { %v1909_v10 = vmul.f32 %v2461_v39, %v1908_v52 }
 0xae8   :  { %v1929_v2 = vmul.f32 %v2463_v9, %v1928_v29 }
 0xae9   :  { %v1910_v18 = vadd.f32 %v2461_v39, %v1909_v10 }
 0xaea   :  { %v1930_v63 = vadd.f32 %v2463_v9, %v1929_v2 }
 0xaeb   :  { %v1914_v3 = vsel %vm1913_vm10, %v2461_v39, %v1910_v18 }
 0xaec   :  { %v1919_v20 = vsel %vm1916_vm11, %v1918_v11, %v1914_v3  ;;  %v1934_v8 = vsel %vm1933_vm14, %v2463_v9, %v1930_v63 }
 0xaed   :  { %v1941_v30 = vmul.f32 %v1919_v20, %v1898_v58  ;;  %v1939_v54 = vsel %vm1936_vm15, %v1938_v53, %v1934_v8 }
 0xaef   :  { %v1942_v43 = vadd.f32 %v1941_v30, %v3291_v26 }
 0xaf1   :  { %2464 = vtanh.f32 %v1942_v43 }
 0xaf7   :  { %v2465_v48 = vpop.eup %2464 }
 0xaf8   :  { %v1944_v35 = vsub.f32 %v3238_v37, %v2465_v48 }
 0xafa   :  { %v1945_v13 = vmul.f32 %v1944_v35, %v1939_v54 }
 0xafc   :  { %v1946_v60 = vadd.f32 %v2465_v48, %v1945_v13 }
 0xafe   :  { %1948 = vst.msk [vmem:[#allocation4 + $0x30] sm:$0xff] %vm112_vm0, %v1946_v60 }
 0xb05   :  { %v1956_v1 = vld [vmem:[#allocation4 + $0x30] sm:$0xff] }
 0xb06   :  { %v1960_v33 = vpack.c.bf16 %v1956_v1, %v1956_v1 }
 0xb08   :  { %2276 = vmatmul.msk.bf16.gmra.mxu1 %vm112_vm0, %v1960_v33 }
 0xb85   :  { %v2013_v12 = vpop.f32.mrf.mxu1 }
 0xb86   :  { %v2014_v34 = vadd.f32 %v2013_v12, %v3216_v42 }
 0xb88   :  { %2024 = vst [vmem:[%s3277_s8 + $0x38] sm:$0xff] %v2014_v34 }
 0xb8d   :  { %v2015_v47 = vpop.f32.mrf.mxu1 }

</bundles_post_ra>
